<compile_context>
chip_gen: v5e
topology: v5e:2x2
jax: 0.10.0
libtpu: 0.0.40
codegen_flags: <defaults>
</compile_context>

<pallas_src>
from functools import partial

import numpy as np

import jax
import jax.numpy as jnp
from jax.experimental import pallas as pl
from jax.experimental.pallas import tpu as pltpu


# ----------------------------------------------------------------------------
# Pallas kernel: the entire SFM_SGN_res_blocks forward for a batch tile.
# ----------------------------------------------------------------------------
def _res_blocks_kernel(x_ref, wb_ref, b_ref, a_ref, o_ref, buf_ref, *,
                       Nb, H, n_blocks):
    """Refs:
       x_ref:  (Nb, H, W*C)               activations, channels-last, lane-dense
       wb_ref: (2*n_blocks, 3, W*C, W*C)  banded conv weights, bfloat16
       b_ref:  (2*n_blocks, 1, W*C)       bias, pre-tiled per lane column (f32)
       a_ref:  (n_blocks, 1, W*C)         PReLU alpha, pre-tiled per lane (f32)
       o_ref:  (Nb, H, W*C)               output
       buf_ref: VMEM (Nb*(H+2), W*C) f32  activation buffer, zero halo rows
                                          between (and around) the Nb images
    """
    Hp = H + 2
    L = Nb * Hp
    Lm2 = L - 2                       # number of conv-output rows (buffer rows 1..L-2)

    # Zero the whole padded buffer once per grid step.  Halo rows must be zero
    # before the first conv; interior rows are overwritten below.  (Cheap, and
    # safe under megacore-parallel grids where scratch is per-core.)
    buf_ref[...] = jnp.zeros_like(buf_ref)

    # Scatter the Nb input images into the buffer interiors (rows b*Hp+1 .. b*Hp+H).
    for b in range(Nb):
        buf_ref[pl.ds(b * Hp + 1, H), :] = x_ref[b]

    # Interior-row mask over the Lm2 conv-output rows (buffer rows 1..L-2):
    # 1.0 on image-interior rows, 0.0 on inter-image halo rows.
    row = jax.lax.broadcasted_iota(jnp.int32, (Lm2, 1), 0) + 1   # buffer row idx
    local = row % Hp
    mask = ((local >= 1) & (local <= H)).astype(jnp.float32)     # (Lm2, 1)

    def conv(li):
        # 3 accumulating MXU matmuls (one per kh tap); bf16 operands, f32 acc.
        acc = None
        for kh in range(3):
            lhs = buf_ref[pl.ds(kh, Lm2), :].astype(jnp.bfloat16)
            p = jnp.dot(lhs, wb_ref[li, kh],
                        preferred_element_type=jnp.float32)
            acc = p if acc is None else acc + p
        return acc + b_ref[li]                     # fused bias add (f32)

    # Current residual-stream activation as a value; halo rows are zero.
    x = buf_ref[pl.ds(1, Lm2), :]                  # (Lm2, W*C) f32
    for blk in range(n_blocks):
        t = conv(2 * blk)
        alpha = a_ref[blk]                         # (1, W*C)
        t = jnp.where(t >= 0.0, t, alpha * t)      # per-channel PReLU
        buf_ref[pl.ds(1, Lm2), :] = t * mask       # stage for 2nd conv (halos -> 0)
        t = conv(2 * blk + 1)
        x = x + t * mask                           # fused residual add (halos stay 0)
        buf_ref[pl.ds(1, Lm2), :] = x              # stage for next block / output

    # Gather per-image interior rows into the lane-dense output block.
    for b in range(Nb):
        o_ref[b] = buf_ref[pl.ds(b * Hp + 1, H), :]


# ----------------------------------------------------------------------------
# Host-side parameter packing
# ----------------------------------------------------------------------------
def _banded_conv_weight(w_oihw, W):
    """(Cout, Cin, 3, 3) conv weight -> (3, W*Cin, W*Cout) banded matrices.

    band[kh, wi*Cin + cin, w*Cout + cout] = w[cout, cin, kh, kw] with
    wi = w + kw - 1; entries with wi outside [0, W) are omitted, which
    implements the zero "same" padding along W.
    """
    Cout, Cin, KH, KW = w_oihw.shape
    band = np.zeros((KH, W * Cin, W * Cout), np.float32)
    for kh in range(KH):
        for kw in range(KW):
            blk = w_oihw[:, :, kh, kw].T               # (Cin, Cout)
            for w in range(W):
                wi = w + kw - 1
                if 0 <= wi < W:
                    band[kh, wi * Cin:(wi + 1) * Cin,
                         w * Cout:(w + 1) * Cout] = blk
    return band


def prepare_params(weights, biases, alphas, W):
    """Pack raw PyTorch-layout parameters into lane-dense kernel inputs."""
    weights = np.asarray(weights, np.float32)          # (n_convs, C, C, 3, 3)
    biases = np.asarray(biases, np.float32)            # (n_convs, C)
    alphas = np.asarray(alphas, np.float32)            # (n_blocks, C)
    n_convs = weights.shape[0]
    wb = np.stack([_banded_conv_weight(weights[i], W) for i in range(n_convs)])
    brow = np.tile(biases, (1, W))[:, None, :]          # (n_convs, 1, W*C)
    arow = np.tile(alphas, (1, W))[:, None, :]          # (n_blocks, 1, W*C)
    return {"wb": jnp.asarray(wb, dtype=jnp.bfloat16),  # bf16 MXU operands
            "brow": jnp.asarray(brow),                  # f32 epilogue
            "arow": jnp.asarray(arow)}                  # f32 epilogue


# ----------------------------------------------------------------------------
# Forward wrapper
# ----------------------------------------------------------------------------
def sfm_sgn_res_blocks(x_nchw, packed, batch_tile=None):
    """Forward pass. x_nchw: (N, C, H, W) float32 -> (N, C, H, W) float32."""
    N, C, H, W = x_nchw.shape
    WC = W * C
    wb, brow, arow = packed["wb"], packed["brow"], packed["arow"]
    n_convs = wb.shape[0]
    n_blocks = n_convs // 2

    # Batch-tile heuristic: aim for M = Nb*H ~ 256 MXU rows per matmul.
    # (On v7x you may prefer a slightly smaller Nb so the grid has >= 2 steps
    #  and both TensorCores get a block.)
    if batch_tile is None:
        batch_tile = max(1, min(N, pl.cdiv(256, H)))
    Nb = batch_tile
    Np = Nb * pl.cdiv(N, Nb)

    # NCHW -> (N, H, W*C): channels-last with W and C merged onto the lane axis.
    # TODO(synk): if this module sits inside a larger network, keep activations
    # in this layout end-to-end instead of transposing per call.
    x2d = jnp.transpose(x_nchw.astype(jnp.float32), (0, 2, 3, 1)).reshape(N, H, WC)
    if Np != N:
        x2d = jnp.pad(x2d, ((0, Np - N), (0, 0), (0, 0)))

    out2d = pl.pallas_call(
        partial(_res_blocks_kernel, Nb=Nb, H=H, n_blocks=n_blocks),
        out_shape=jax.ShapeDtypeStruct((Np, H, WC), jnp.float32),
        grid=(Np // Nb,),
        in_specs=[
            pl.BlockSpec((Nb, H, WC), lambda n: (n, 0, 0)),
            pl.BlockSpec((n_convs, 3, WC, WC), lambda n: (0, 0, 0, 0)),
            pl.BlockSpec((n_convs, 1, WC), lambda n: (0, 0, 0)),
            pl.BlockSpec((n_blocks, 1, WC), lambda n: (0, 0, 0)),
        ],
        out_specs=pl.BlockSpec((Nb, H, WC), lambda n: (n, 0, 0)),
        scratch_shapes=[pltpu.VMEM((Nb * (H + 2), WC), jnp.float32)],
        compiler_params=pltpu.CompilerParams(
            dimension_semantics=("parallel",),      # batch blocks -> v7x TCs
            vmem_limit_bytes=32 * 1024 * 1024,
        ),
    )(x2d, wb, brow, arow)

    out2d = out2d[:N]
    return jnp.transpose(out2d.reshape(N, H, W, C), (0, 3, 1, 2))


# ----------------------------------------------------------------------------
# Pure-JAX reference (matches the PyTorch module) for validation.
# ----------------------------------------------------------------------------
def _reference_forward(x, weights, biases, alphas):
    def conv(h, w, b):
        y = jax.lax.conv_general_dilated(
            h, w, window_strides=(1, 1), padding="SAME",
            dimension_numbers=("NCHW", "OIHW", "NCHW"),
            precision=jax.lax.Precision.HIGHEST)
        return y + b[None, :, None, None]

    h = x
    n_blocks = alphas.shape[0]
    for blk in range(n_blocks):
        t = conv(h, weights[2 * blk], biases[2 * blk])
        a = alphas[blk][None, :, None, None]
        t = jnp.where(t >= 0, t, a * t)
        t = conv(t, weights[2 * blk + 1], biases[2 * blk + 1])
        h = h + t
    return h


if __name__ == "__main__":
    nf, N, H, W = 8, 2, 16, 16            # nf=8 matches the PyTorch default
    key = jax.random.PRNGKey(0)
    kx, kw, kb, ka = jax.random.split(key, 4)

    x = jax.random.normal(kx, (N, nf, H, W), jnp.float32)
    weights = jax.random.normal(kw, (8, nf, nf, 3, 3), jnp.float32) / np.sqrt(9.0 * nf)
    biases = 0.05 * jax.random.normal(kb, (8, nf), jnp.float32)
    alphas = 0.25 + 0.1 * jax.random.uniform(ka, (4, nf), jnp.float32)

    packed = prepare_params(weights, biases, alphas, W)

    fwd = jax.jit(sfm_sgn_res_blocks)
    out = fwd(x, packed)
    out = jax.block_until_ready(out)

    assert out.shape == (N, nf, H, W) and out.dtype == jnp.float32
    assert bool(jnp.all(jnp.isfinite(out)))

    # bf16 MXU operands with f32 accumulation: expect ~1e-3..1e-2 relative
    # deviation from the all-f32 reference; 2e-2 keeps comfortable headroom.
    ref = _reference_forward(x, weights, biases, alphas)
    rel_err = float(jnp.max(jnp.abs(out - ref)) / (jnp.max(jnp.abs(ref)) + 1e-8))
    assert rel_err < 2e-2, f"mismatch vs reference: rel_err={rel_err}"

    print("KERNEL_OK")
</pallas_src>

<mosaic_0001>
module attributes {stable_mosaic.version = 11 : i64} {
  func.func @_res_blocks_kernel(%arg0: i32, %arg1: memref<2x16x128xf32, #tpu.memory_space<vmem>>, %arg2: memref<8x3x128x128xbf16, #tpu.memory_space<vmem>>, %arg3: memref<8x1x128xf32, #tpu.memory_space<vmem>>, %arg4: memref<4x1x128xf32, #tpu.memory_space<vmem>>, %arg5: memref<2x16x128xf32, #tpu.memory_space<vmem>>, %arg6: memref<36x128xf32, #tpu.memory_space<vmem>>) attributes {dimension_semantics = [#tpu.dimension_semantics<parallel>], iteration_bounds = array<i64: 1>, scalar_prefetch = 0 : i64, scratch_operands = 1 : i64, tpu.core_type = #tpu.core_type<tc>, window_params = [{transform_indices = @transform_0, window_bounds = array<i64: 2, 16, 128>}, {pipeline_mode = #tpu.pipeline_mode<synchronous>, transform_indices = @transform_1, window_bounds = array<i64: 8, 3, 128, 128>}, {pipeline_mode = #tpu.pipeline_mode<synchronous>, transform_indices = @transform_2, window_bounds = array<i64: 8, 1, 128>}, {pipeline_mode = #tpu.pipeline_mode<synchronous>, transform_indices = @transform_3, window_bounds = array<i64: 4, 1, 128>}, {transform_indices = @transform_4, window_bounds = array<i64: 2, 16, 128>}]} {
    %cst = arith.constant 0.000000e+00 : f32
    %0 = vector.broadcast %cst : f32 to vector<36x128xf32>
    %c0 = arith.constant 0 : index
    %c0_0 = arith.constant 0 : index
    %1 = vector.load %arg6[%c0, %c0_0] : memref<36x128xf32, #tpu.memory_space<vmem>>, vector<36x128xf32>
    tpu.vector_store %arg6[%c0, %c0_0], %0 {strides = array<i32>} : memref<36x128xf32, #tpu.memory_space<vmem>>, vector<36x128xf32>,
    %c0_1 = arith.constant 0 : index
    %c0_2 = arith.constant 0 : index
    %c0_3 = arith.constant 0 : index
    %2 = vector.load %arg1[%c0_1, %c0_2, %c0_3] : memref<2x16x128xf32, #tpu.memory_space<vmem>>, vector<1x16x128xf32>
    %3 = vector.shape_cast %2 : vector<1x16x128xf32> to vector<16x128xf32>
    %c1 = arith.constant 1 : index
    %c0_4 = arith.constant 0 : index
    %4 = vector.load %arg6[%c1, %c0_4] : memref<36x128xf32, #tpu.memory_space<vmem>>, vector<16x128xf32>
    tpu.vector_store %arg6[%c1, %c0_4], %3 {strides = array<i32>} : memref<36x128xf32, #tpu.memory_space<vmem>>, vector<16x128xf32>,
    %c1_5 = arith.constant 1 : index
    %c0_6 = arith.constant 0 : index
    %c0_7 = arith.constant 0 : index
    %5 = vector.load %arg1[%c1_5, %c0_6, %c0_7] : memref<2x16x128xf32, #tpu.memory_space<vmem>>, vector<1x16x128xf32>
    %6 = vector.shape_cast %5 : vector<1x16x128xf32> to vector<16x128xf32>
    %c19 = arith.constant 19 : index
    %c0_8 = arith.constant 0 : index
    %7 = vector.load %arg6[%c19, %c0_8] : memref<36x128xf32, #tpu.memory_space<vmem>>, vector<16x128xf32>
    tpu.vector_store %arg6[%c19, %c0_8], %6 {strides = array<i32>} : memref<36x128xf32, #tpu.memory_space<vmem>>, vector<16x128xf32>,
    %8 = tpu.iota {dimensions = array<i32: 0>} : vector<34x1xi32>
    %c1_i32 = arith.constant 1 : i32
    %9 = vector.broadcast %c1_i32 : i32 to vector<34x1xi32>
    %10 = arith.addi %8, %9 : vector<34x1xi32>
    %c18_i32 = arith.constant 18 : i32
    %c0_i32 = arith.constant 0 : i32
    %11 = arith.cmpi eq, %c18_i32, %c0_i32 : i32
    %c1_i32_9 = arith.constant 1 : i32
    %12 = arith.select %11, %c1_i32_9, %c18_i32 : i32
    %13 = vector.broadcast %12 : i32 to vector<34x1xi32>
    %14 = arith.remsi %10, %13 : vector<34x1xi32>
    %c0_i32_10 = arith.constant 0 : i32
    %15 = vector.broadcast %c0_i32_10 : i32 to vector<34x1xi32>
    %16 = arith.cmpi ne, %14, %15 : vector<34x1xi32>
    %c0_i32_11 = arith.constant 0 : i32
    %17 = vector.broadcast %c0_i32_11 : i32 to vector<34x1xi32>
    %18 = arith.cmpi slt, %14, %17 : vector<34x1xi32>
    %c0_i32_12 = arith.constant 0 : i32
    %19 = arith.cmpi slt, %12, %c0_i32_12 : i32
    %20 = vector.broadcast %19 : i1 to vector<34x1xi1>
    %21 = vector.broadcast %20 : vector<34x1xi1> to vector<34x1xi1>
    %22 = arith.xori %18, %21 : vector<34x1xi1>
    %23 = arith.andi %22, %16 : vector<34x1xi1>
    %24 = vector.broadcast %12 : i32 to vector<34x1xi32>
    %25 = arith.addi %14, %24 : vector<34x1xi32>
    %26 = arith.select %23, %25, %14 : vector<34x1xi1>, vector<34x1xi32>
    %c1_i32_13 = arith.constant 1 : i32
    %27 = vector.broadcast %c1_i32_13 : i32 to vector<34x1xi32>
    %28 = arith.cmpi sge, %26, %27 : vector<34x1xi32>
    %c16_i32 = arith.constant 16 : i32
    %29 = vector.broadcast %c16_i32 : i32 to vector<34x1xi32>
    %30 = arith.cmpi sle, %26, %29 : vector<34x1xi32>
    %31 = arith.andi %28, %30 : vector<34x1xi1>
    %32 = arith.extui %31 : vector<34x1xi1> to vector<34x1xi32>
    %33 = arith.sitofp %32 : vector<34x1xi32> to vector<34x1xf32>
    %c1_14 = arith.constant 1 : index
    %c0_15 = arith.constant 0 : index
    %34 = vector.load %arg6[%c1_14, %c0_15] : memref<36x128xf32, #tpu.memory_space<vmem>>, vector<34x128xf32>
    %c0_16 = arith.constant 0 : index
    %c0_17 = arith.constant 0 : index
    %35 = vector.load %arg6[%c0_16, %c0_17] : memref<36x128xf32, #tpu.memory_space<vmem>>, vector<34x128xf32>
    %36 = arith.truncf %35 : vector<34x128xf32> to vector<34x128xbf16>
    %c0_18 = arith.constant 0 : index
    %c0_19 = arith.constant 0 : index
    %c0_20 = arith.constant 0 : index
    %c0_21 = arith.constant 0 : index
    %37 = vector.load %arg2[%c0_18, %c0_19, %c0_20, %c0_21] : memref<8x3x128x128xbf16, #tpu.memory_space<vmem>>, vector<1x1x128x128xbf16>
    %38 = vector.shape_cast %37 : vector<1x1x128x128xbf16> to vector<128x128xbf16>
    %cst_22 = arith.constant dense<0.000000e+00> : vector<34x128xf32>
    %39 = tpu.matmul %36, %38, %cst_22 {dimension_numbers = #tpu.dot_dimension_numbers<[1], [0], [0], [1], [0, 0, 1, 1], [], []>} : vector<34x128xbf16>, vector<128x128xbf16>, vector<34x128xf32> -> vector<34x128xf32>
    %c1_23 = arith.constant 1 : index
    %c0_24 = arith.constant 0 : index
    %40 = vector.load %arg6[%c1_23, %c0_24] : memref<36x128xf32, #tpu.memory_space<vmem>>, vector<34x128xf32>
    %41 = arith.truncf %40 : vector<34x128xf32> to vector<34x128xbf16>
    %c0_25 = arith.constant 0 : index
    %c1_26 = arith.constant 1 : index
    %c0_27 = arith.constant 0 : index
    %c0_28 = arith.constant 0 : index
    %42 = vector.load %arg2[%c0_25, %c1_26, %c0_27, %c0_28] : memref<8x3x128x128xbf16, #tpu.memory_space<vmem>>, vector<1x1x128x128xbf16>
    %43 = vector.shape_cast %42 : vector<1x1x128x128xbf16> to vector<128x128xbf16>
    %cst_29 = arith.constant dense<0.000000e+00> : vector<34x128xf32>
    %44 = tpu.matmul %41, %43, %cst_29 {dimension_numbers = #tpu.dot_dimension_numbers<[1], [0], [0], [1], [0, 0, 1, 1], [], []>} : vector<34x128xbf16>, vector<128x128xbf16>, vector<34x128xf32> -> vector<34x128xf32>
    %45 = arith.addf %39, %44 : vector<34x128xf32>
    %c2 = arith.constant 2 : index
    %c0_30 = arith.constant 0 : index
    %46 = vector.load %arg6[%c2, %c0_30] : memref<36x128xf32, #tpu.memory_space<vmem>>, vector<34x128xf32>
    %47 = arith.truncf %46 : vector<34x128xf32> to vector<34x128xbf16>
    %c0_31 = arith.constant 0 : index
    %c2_32 = arith.constant 2 : index
    %c0_33 = arith.constant 0 : index
    %c0_34 = arith.constant 0 : index
    %48 = vector.load %arg2[%c0_31, %c2_32, %c0_33, %c0_34] : memref<8x3x128x128xbf16, #tpu.memory_space<vmem>>, vector<1x1x128x128xbf16>
    %49 = vector.shape_cast %48 : vector<1x1x128x128xbf16> to vector<128x128xbf16>
    %cst_35 = arith.constant dense<0.000000e+00> : vector<34x128xf32>
    %50 = tpu.matmul %47, %49, %cst_35 {dimension_numbers = #tpu.dot_dimension_numbers<[1], [0], [0], [1], [0, 0, 1, 1], [], []>} : vector<34x128xbf16>, vector<128x128xbf16>, vector<34x128xf32> -> vector<34x128xf32>
    %51 = arith.addf %45, %50 : vector<34x128xf32>
    %c0_36 = arith.constant 0 : index
    %c0_37 = arith.constant 0 : index
    %c0_38 = arith.constant 0 : index
    %52 = vector.load %arg3[%c0_36, %c0_37, %c0_38] : memref<8x1x128xf32, #tpu.memory_space<vmem>>, vector<1x1x128xf32>
    %53 = vector.shape_cast %52 : vector<1x1x128xf32> to vector<1x128xf32>
    %54 = vector.broadcast %53 : vector<1x128xf32> to vector<34x128xf32>
    %55 = arith.addf %51, %54 : vector<34x128xf32>
    %c0_39 = arith.constant 0 : index
    %c0_40 = arith.constant 0 : index
    %c0_41 = arith.constant 0 : index
    %56 = vector.load %arg4[%c0_39, %c0_40, %c0_41] : memref<4x1x128xf32, #tpu.memory_space<vmem>>, vector<1x1x128xf32>
    %57 = vector.shape_cast %56 : vector<1x1x128xf32> to vector<1x128xf32>
    %cst_42 = arith.constant 0.000000e+00 : f32
    %58 = vector.broadcast %cst_42 : f32 to vector<34x128xf32>
    %59 = arith.cmpf oge, %55, %58 : vector<34x128xf32>
    %60 = vector.broadcast %57 : vector<1x128xf32> to vector<34x128xf32>
    %61 = arith.mulf %60, %55 : vector<34x128xf32>
    %62 = arith.select %59, %55, %61 : vector<34x128xi1>, vector<34x128xf32>
    %63 = vector.broadcast %33 : vector<34x1xf32> to vector<34x128xf32>
    %64 = arith.mulf %62, %63 : vector<34x128xf32>
    %c1_43 = arith.constant 1 : index
    %c0_44 = arith.constant 0 : index
    %65 = vector.load %arg6[%c1_43, %c0_44] : memref<36x128xf32, #tpu.memory_space<vmem>>, vector<34x128xf32>
    tpu.vector_store %arg6[%c1_43, %c0_44], %64 {strides = array<i32>} : memref<36x128xf32, #tpu.memory_space<vmem>>, vector<34x128xf32>,
    %c0_45 = arith.constant 0 : index
    %c0_46 = arith.constant 0 : index
    %66 = vector.load %arg6[%c0_45, %c0_46] : memref<36x128xf32, #tpu.memory_space<vmem>>, vector<34x128xf32>
    %67 = arith.truncf %66 : vector<34x128xf32> to vector<34x128xbf16>
    %c1_47 = arith.constant 1 : index
    %c0_48 = arith.constant 0 : index
    %c0_49 = arith.constant 0 : index
    %c0_50 = arith.constant 0 : index
    %68 = vector.load %arg2[%c1_47, %c0_48, %c0_49, %c0_50] : memref<8x3x128x128xbf16, #tpu.memory_space<vmem>>, vector<1x1x128x128xbf16>
    %69 = vector.shape_cast %68 : vector<1x1x128x128xbf16> to vector<128x128xbf16>
    %cst_51 = arith.constant dense<0.000000e+00> : vector<34x128xf32>
    %70 = tpu.matmul %67, %69, %cst_51 {dimension_numbers = #tpu.dot_dimension_numbers<[1], [0], [0], [1], [0, 0, 1, 1], [], []>} : vector<34x128xbf16>, vector<128x128xbf16>, vector<34x128xf32> -> vector<34x128xf32>
    %c1_52 = arith.constant 1 : index
    %c0_53 = arith.constant 0 : index
    %71 = vector.load %arg6[%c1_52, %c0_53] : memref<36x128xf32, #tpu.memory_space<vmem>>, vector<34x128xf32>
    %72 = arith.truncf %71 : vector<34x128xf32> to vector<34x128xbf16>
    %c1_54 = arith.constant 1 : index
    %c1_55 = arith.constant 1 : index
    %c0_56 = arith.constant 0 : index
    %c0_57 = arith.constant 0 : index
    %73 = vector.load %arg2[%c1_54, %c1_55, %c0_56, %c0_57] : memref<8x3x128x128xbf16, #tpu.memory_space<vmem>>, vector<1x1x128x128xbf16>
    %74 = vector.shape_cast %73 : vector<1x1x128x128xbf16> to vector<128x128xbf16>
    %cst_58 = arith.constant dense<0.000000e+00> : vector<34x128xf32>
    %75 = tpu.matmul %72, %74, %cst_58 {dimension_numbers = #tpu.dot_dimension_numbers<[1], [0], [0], [1], [0, 0, 1, 1], [], []>} : vector<34x128xbf16>, vector<128x128xbf16>, vector<34x128xf32> -> vector<34x128xf32>
    %76 = arith.addf %70, %75 : vector<34x128xf32>
    %c2_59 = arith.constant 2 : index
    %c0_60 = arith.constant 0 : index
    %77 = vector.load %arg6[%c2_59, %c0_60] : memref<36x128xf32, #tpu.memory_space<vmem>>, vector<34x128xf32>
    %78 = arith.truncf %77 : vector<34x128xf32> to vector<34x128xbf16>
    %c1_61 = arith.constant 1 : index
    %c2_62 = arith.constant 2 : index
    %c0_63 = arith.constant 0 : index
    %c0_64 = arith.constant 0 : index
    %79 = vector.load %arg2[%c1_61, %c2_62, %c0_63, %c0_64] : memref<8x3x128x128xbf16, #tpu.memory_space<vmem>>, vector<1x1x128x128xbf16>
    %80 = vector.shape_cast %79 : vector<1x1x128x128xbf16> to vector<128x128xbf16>
    %cst_65 = arith.constant dense<0.000000e+00> : vector<34x128xf32>
    %81 = tpu.matmul %78, %80, %cst_65 {dimension_numbers = #tpu.dot_dimension_numbers<[1], [0], [0], [1], [0, 0, 1, 1], [], []>} : vector<34x128xbf16>, vector<128x128xbf16>, vector<34x128xf32> -> vector<34x128xf32>
    %82 = arith.addf %76, %81 : vector<34x128xf32>
    %c1_66 = arith.constant 1 : index
    %c0_67 = arith.constant 0 : index
    %c0_68 = arith.constant 0 : index
    %83 = vector.load %arg3[%c1_66, %c0_67, %c0_68] : memref<8x1x128xf32, #tpu.memory_space<vmem>>, vector<1x1x128xf32>
    %84 = vector.shape_cast %83 : vector<1x1x128xf32> to vector<1x128xf32>
    %85 = vector.broadcast %84 : vector<1x128xf32> to vector<34x128xf32>
    %86 = arith.addf %82, %85 : vector<34x128xf32>
    %87 = vector.broadcast %33 : vector<34x1xf32> to vector<34x128xf32>
    %88 = arith.mulf %86, %87 : vector<34x128xf32>
    %89 = arith.addf %34, %88 : vector<34x128xf32>
    %c1_69 = arith.constant 1 : index
    %c0_70 = arith.constant 0 : index
    %90 = vector.load %arg6[%c1_69, %c0_70] : memref<36x128xf32, #tpu.memory_space<vmem>>, vector<34x128xf32>
    tpu.vector_store %arg6[%c1_69, %c0_70], %89 {strides = array<i32>} : memref<36x128xf32, #tpu.memory_space<vmem>>, vector<34x128xf32>,
    %c0_71 = arith.constant 0 : index
    %c0_72 = arith.constant 0 : index
    %91 = vector.load %arg6[%c0_71, %c0_72] : memref<36x128xf32, #tpu.memory_space<vmem>>, vector<34x128xf32>
    %92 = arith.truncf %91 : vector<34x128xf32> to vector<34x128xbf16>
    %c2_73 = arith.constant 2 : index
    %c0_74 = arith.constant 0 : index
    %c0_75 = arith.constant 0 : index
    %c0_76 = arith.constant 0 : index
    %93 = vector.load %arg2[%c2_73, %c0_74, %c0_75, %c0_76] : memref<8x3x128x128xbf16, #tpu.memory_space<vmem>>, vector<1x1x128x128xbf16>
    %94 = vector.shape_cast %93 : vector<1x1x128x128xbf16> to vector<128x128xbf16>
    %cst_77 = arith.constant dense<0.000000e+00> : vector<34x128xf32>
    %95 = tpu.matmul %92, %94, %cst_77 {dimension_numbers = #tpu.dot_dimension_numbers<[1], [0], [0], [1], [0, 0, 1, 1], [], []>} : vector<34x128xbf16>, vector<128x128xbf16>, vector<34x128xf32> -> vector<34x128xf32>
    %c1_78 = arith.constant 1 : index
    %c0_79 = arith.constant 0 : index
    %96 = vector.load %arg6[%c1_78, %c0_79] : memref<36x128xf32, #tpu.memory_space<vmem>>, vector<34x128xf32>
    %97 = arith.truncf %96 : vector<34x128xf32> to vector<34x128xbf16>
    %c2_80 = arith.constant 2 : index
    %c1_81 = arith.constant 1 : index
    %c0_82 = arith.constant 0 : index
    %c0_83 = arith.constant 0 : index
    %98 = vector.load %arg2[%c2_80, %c1_81, %c0_82, %c0_83] : memref<8x3x128x128xbf16, #tpu.memory_space<vmem>>, vector<1x1x128x128xbf16>
    %99 = vector.shape_cast %98 : vector<1x1x128x128xbf16> to vector<128x128xbf16>
    %cst_84 = arith.constant dense<0.000000e+00> : vector<34x128xf32>
    %100 = tpu.matmul %97, %99, %cst_84 {dimension_numbers = #tpu.dot_dimension_numbers<[1], [0], [0], [1], [0, 0, 1, 1], [], []>} : vector<34x128xbf16>, vector<128x128xbf16>, vector<34x128xf32> -> vector<34x128xf32>
    %101 = arith.addf %95, %100 : vector<34x128xf32>
    %c2_85 = arith.constant 2 : index
    %c0_86 = arith.constant 0 : index
    %102 = vector.load %arg6[%c2_85, %c0_86] : memref<36x128xf32, #tpu.memory_space<vmem>>, vector<34x128xf32>
    %103 = arith.truncf %102 : vector<34x128xf32> to vector<34x128xbf16>
    %c2_87 = arith.constant 2 : index
    %c2_88 = arith.constant 2 : index
    %c0_89 = arith.constant 0 : index
    %c0_90 = arith.constant 0 : index
    %104 = vector.load %arg2[%c2_87, %c2_88, %c0_89, %c0_90] : memref<8x3x128x128xbf16, #tpu.memory_space<vmem>>, vector<1x1x128x128xbf16>
    %105 = vector.shape_cast %104 : vector<1x1x128x128xbf16> to vector<128x128xbf16>
    %cst_91 = arith.constant dense<0.000000e+00> : vector<34x128xf32>
    %106 = tpu.matmul %103, %105, %cst_91 {dimension_numbers = #tpu.dot_dimension_numbers<[1], [0], [0], [1], [0, 0, 1, 1], [], []>} : vector<34x128xbf16>, vector<128x128xbf16>, vector<34x128xf32> -> vector<34x128xf32>
    %107 = arith.addf %101, %106 : vector<34x128xf32>
    %c2_92 = arith.constant 2 : index
    %c0_93 = arith.constant 0 : index
    %c0_94 = arith.constant 0 : index
    %108 = vector.load %arg3[%c2_92, %c0_93, %c0_94] : memref<8x1x128xf32, #tpu.memory_space<vmem>>, vector<1x1x128xf32>
    %109 = vector.shape_cast %108 : vector<1x1x128xf32> to vector<1x128xf32>
    %110 = vector.broadcast %109 : vector<1x128xf32> to vector<34x128xf32>
    %111 = arith.addf %107, %110 : vector<34x128xf32>
    %c1_95 = arith.constant 1 : index
    %c0_96 = arith.constant 0 : index
    %c0_97 = arith.constant 0 : index
    %112 = vector.load %arg4[%c1_95, %c0_96, %c0_97] : memref<4x1x128xf32, #tpu.memory_space<vmem>>, vector<1x1x128xf32>
    %113 = vector.shape_cast %112 : vector<1x1x128xf32> to vector<1x128xf32>
    %cst_98 = arith.constant 0.000000e+00 : f32
    %114 = vector.broadcast %cst_98 : f32 to vector<34x128xf32>
    %115 = arith.cmpf oge, %111, %114 : vector<34x128xf32>
    %116 = vector.broadcast %113 : vector<1x128xf32> to vector<34x128xf32>
    %117 = arith.mulf %116, %111 : vector<34x128xf32>
    %118 = arith.select %115, %111, %117 : vector<34x128xi1>, vector<34x128xf32>
    %119 = vector.broadcast %33 : vector<34x1xf32> to vector<34x128xf32>
    %120 = arith.mulf %118, %119 : vector<34x128xf32>
    %c1_99 = arith.constant 1 : index
    %c0_100 = arith.constant 0 : index
    %121 = vector.load %arg6[%c1_99, %c0_100] : memref<36x128xf32, #tpu.memory_space<vmem>>, vector<34x128xf32>
    tpu.vector_store %arg6[%c1_99, %c0_100], %120 {strides = array<i32>} : memref<36x128xf32, #tpu.memory_space<vmem>>, vector<34x128xf32>,
    %c0_101 = arith.constant 0 : index
    %c0_102 = arith.constant 0 : index
    %122 = vector.load %arg6[%c0_101, %c0_102] : memref<36x128xf32, #tpu.memory_space<vmem>>, vector<34x128xf32>
    %123 = arith.truncf %122 : vector<34x128xf32> to vector<34x128xbf16>
    %c3 = arith.constant 3 : index
    %c0_103 = arith.constant 0 : index
    %c0_104 = arith.constant 0 : index
    %c0_105 = arith.constant 0 : index
    %124 = vector.load %arg2[%c3, %c0_103, %c0_104, %c0_105] : memref<8x3x128x128xbf16, #tpu.memory_space<vmem>>, vector<1x1x128x128xbf16>
    %125 = vector.shape_cast %124 : vector<1x1x128x128xbf16> to vector<128x128xbf16>
    %cst_106 = arith.constant dense<0.000000e+00> : vector<34x128xf32>
    %126 = tpu.matmul %123, %125, %cst_106 {dimension_numbers = #tpu.dot_dimension_numbers<[1], [0], [0], [1], [0, 0, 1, 1], [], []>} : vector<34x128xbf16>, vector<128x128xbf16>, vector<34x128xf32> -> vector<34x128xf32>
    %c1_107 = arith.constant 1 : index
    %c0_108 = arith.constant 0 : index
    %127 = vector.load %arg6[%c1_107, %c0_108] : memref<36x128xf32, #tpu.memory_space<vmem>>, vector<34x128xf32>
    %128 = arith.truncf %127 : vector<34x128xf32> to vector<34x128xbf16>
    %c3_109 = arith.constant 3 : index
    %c1_110 = arith.constant 1 : index
    %c0_111 = arith.constant 0 : index
    %c0_112 = arith.constant 0 : index
    %129 = vector.load %arg2[%c3_109, %c1_110, %c0_111, %c0_112] : memref<8x3x128x128xbf16, #tpu.memory_space<vmem>>, vector<1x1x128x128xbf16>
    %130 = vector.shape_cast %129 : vector<1x1x128x128xbf16> to vector<128x128xbf16>
    %cst_113 = arith.constant dense<0.000000e+00> : vector<34x128xf32>
    %131 = tpu.matmul %128, %130, %cst_113 {dimension_numbers = #tpu.dot_dimension_numbers<[1], [0], [0], [1], [0, 0, 1, 1], [], []>} : vector<34x128xbf16>, vector<128x128xbf16>, vector<34x128xf32> -> vector<34x128xf32>
    %132 = arith.addf %126, %131 : vector<34x128xf32>
    %c2_114 = arith.constant 2 : index
    %c0_115 = arith.constant 0 : index
    %133 = vector.load %arg6[%c2_114, %c0_115] : memref<36x128xf32, #tpu.memory_space<vmem>>, vector<34x128xf32>
    %134 = arith.truncf %133 : vector<34x128xf32> to vector<34x128xbf16>
    %c3_116 = arith.constant 3 : index
    %c2_117 = arith.constant 2 : index
    %c0_118 = arith.constant 0 : index
    %c0_119 = arith.constant 0 : index
    %135 = vector.load %arg2[%c3_116, %c2_117, %c0_118, %c0_119] : memref<8x3x128x128xbf16, #tpu.memory_space<vmem>>, vector<1x1x128x128xbf16>
    %136 = vector.shape_cast %135 : vector<1x1x128x128xbf16> to vector<128x128xbf16>
    %cst_120 = arith.constant dense<0.000000e+00> : vector<34x128xf32>
    %137 = tpu.matmul %134, %136, %cst_120 {dimension_numbers = #tpu.dot_dimension_numbers<[1], [0], [0], [1], [0, 0, 1, 1], [], []>} : vector<34x128xbf16>, vector<128x128xbf16>, vector<34x128xf32> -> vector<34x128xf32>
    %138 = arith.addf %132, %137 : vector<34x128xf32>
    %c3_121 = arith.constant 3 : index
    %c0_122 = arith.constant 0 : index
    %c0_123 = arith.constant 0 : index
    %139 = vector.load %arg3[%c3_121, %c0_122, %c0_123] : memref<8x1x128xf32, #tpu.memory_space<vmem>>, vector<1x1x128xf32>
    %140 = vector.shape_cast %139 : vector<1x1x128xf32> to vector<1x128xf32>
    %141 = vector.broadcast %140 : vector<1x128xf32> to vector<34x128xf32>
    %142 = arith.addf %138, %141 : vector<34x128xf32>
    %143 = vector.broadcast %33 : vector<34x1xf32> to vector<34x128xf32>
    %144 = arith.mulf %142, %143 : vector<34x128xf32>
    %145 = arith.addf %89, %144 : vector<34x128xf32>
    %c1_124 = arith.constant 1 : index
    %c0_125 = arith.constant 0 : index
    %146 = vector.load %arg6[%c1_124, %c0_125] : memref<36x128xf32, #tpu.memory_space<vmem>>, vector<34x128xf32>
    tpu.vector_store %arg6[%c1_124, %c0_125], %145 {strides = array<i32>} : memref<36x128xf32, #tpu.memory_space<vmem>>, vector<34x128xf32>,
    %c0_126 = arith.constant 0 : index
    %c0_127 = arith.constant 0 : index
    %147 = vector.load %arg6[%c0_126, %c0_127] : memref<36x128xf32, #tpu.memory_space<vmem>>, vector<34x128xf32>
    %148 = arith.truncf %147 : vector<34x128xf32> to vector<34x128xbf16>
    %c4 = arith.constant 4 : index
    %c0_128 = arith.constant 0 : index
    %c0_129 = arith.constant 0 : index
    %c0_130 = arith.constant 0 : index
    %149 = vector.load %arg2[%c4, %c0_128, %c0_129, %c0_130] : memref<8x3x128x128xbf16, #tpu.memory_space<vmem>>, vector<1x1x128x128xbf16>
    %150 = vector.shape_cast %149 : vector<1x1x128x128xbf16> to vector<128x128xbf16>
    %cst_131 = arith.constant dense<0.000000e+00> : vector<34x128xf32>
    %151 = tpu.matmul %148, %150, %cst_131 {dimension_numbers = #tpu.dot_dimension_numbers<[1], [0], [0], [1], [0, 0, 1, 1], [], []>} : vector<34x128xbf16>, vector<128x128xbf16>, vector<34x128xf32> -> vector<34x128xf32>
    %c1_132 = arith.constant 1 : index
    %c0_133 = arith.constant 0 : index
    %152 = vector.load %arg6[%c1_132, %c0_133] : memref<36x128xf32, #tpu.memory_space<vmem>>, vector<34x128xf32>
    %153 = arith.truncf %152 : vector<34x128xf32> to vector<34x128xbf16>
    %c4_134 = arith.constant 4 : index
    %c1_135 = arith.constant 1 : index
    %c0_136 = arith.constant 0 : index
    %c0_137 = arith.constant 0 : index
    %154 = vector.load %arg2[%c4_134, %c1_135, %c0_136, %c0_137] : memref<8x3x128x128xbf16, #tpu.memory_space<vmem>>, vector<1x1x128x128xbf16>
    %155 = vector.shape_cast %154 : vector<1x1x128x128xbf16> to vector<128x128xbf16>
    %cst_138 = arith.constant dense<0.000000e+00> : vector<34x128xf32>
    %156 = tpu.matmul %153, %155, %cst_138 {dimension_numbers = #tpu.dot_dimension_numbers<[1], [0], [0], [1], [0, 0, 1, 1], [], []>} : vector<34x128xbf16>, vector<128x128xbf16>, vector<34x128xf32> -> vector<34x128xf32>
    %157 = arith.addf %151, %156 : vector<34x128xf32>
    %c2_139 = arith.constant 2 : index
    %c0_140 = arith.constant 0 : index
    %158 = vector.load %arg6[%c2_139, %c0_140] : memref<36x128xf32, #tpu.memory_space<vmem>>, vector<34x128xf32>
    %159 = arith.truncf %158 : vector<34x128xf32> to vector<34x128xbf16>
    %c4_141 = arith.constant 4 : index
    %c2_142 = arith.constant 2 : index
    %c0_143 = arith.constant 0 : index
    %c0_144 = arith.constant 0 : index
    %160 = vector.load %arg2[%c4_141, %c2_142, %c0_143, %c0_144] : memref<8x3x128x128xbf16, #tpu.memory_space<vmem>>, vector<1x1x128x128xbf16>
    %161 = vector.shape_cast %160 : vector<1x1x128x128xbf16> to vector<128x128xbf16>
    %cst_145 = arith.constant dense<0.000000e+00> : vector<34x128xf32>
    %162 = tpu.matmul %159, %161, %cst_145 {dimension_numbers = #tpu.dot_dimension_numbers<[1], [0], [0], [1], [0, 0, 1, 1], [], []>} : vector<34x128xbf16>, vector<128x128xbf16>, vector<34x128xf32> -> vector<34x128xf32>
    %163 = arith.addf %157, %162 : vector<34x128xf32>
    %c4_146 = arith.constant 4 : index
    %c0_147 = arith.constant 0 : index
    %c0_148 = arith.constant 0 : index
    %164 = vector.load %arg3[%c4_146, %c0_147, %c0_148] : memref<8x1x128xf32, #tpu.memory_space<vmem>>, vector<1x1x128xf32>
    %165 = vector.shape_cast %164 : vector<1x1x128xf32> to vector<1x128xf32>
    %166 = vector.broadcast %165 : vector<1x128xf32> to vector<34x128xf32>
    %167 = arith.addf %163, %166 : vector<34x128xf32>
    %c2_149 = arith.constant 2 : index
    %c0_150 = arith.constant 0 : index
    %c0_151 = arith.constant 0 : index
    %168 = vector.load %arg4[%c2_149, %c0_150, %c0_151] : memref<4x1x128xf32, #tpu.memory_space<vmem>>, vector<1x1x128xf32>
    %169 = vector.shape_cast %168 : vector<1x1x128xf32> to vector<1x128xf32>
    %cst_152 = arith.constant 0.000000e+00 : f32
    %170 = vector.broadcast %cst_152 : f32 to vector<34x128xf32>
    %171 = arith.cmpf oge, %167, %170 : vector<34x128xf32>
    %172 = vector.broadcast %169 : vector<1x128xf32> to vector<34x128xf32>
    %173 = arith.mulf %172, %167 : vector<34x128xf32>
    %174 = arith.select %171, %167, %173 : vector<34x128xi1>, vector<34x128xf32>
    %175 = vector.broadcast %33 : vector<34x1xf32> to vector<34x128xf32>
    %176 = arith.mulf %174, %175 : vector<34x128xf32>
    %c1_153 = arith.constant 1 : index
    %c0_154 = arith.constant 0 : index
    %177 = vector.load %arg6[%c1_153, %c0_154] : memref<36x128xf32, #tpu.memory_space<vmem>>, vector<34x128xf32>
    tpu.vector_store %arg6[%c1_153, %c0_154], %176 {strides = array<i32>} : memref<36x128xf32, #tpu.memory_space<vmem>>, vector<34x128xf32>,
    %c0_155 = arith.constant 0 : index
    %c0_156 = arith.constant 0 : index
    %178 = vector.load %arg6[%c0_155, %c0_156] : memref<36x128xf32, #tpu.memory_space<vmem>>, vector<34x128xf32>
    %179 = arith.truncf %178 : vector<34x128xf32> to vector<34x128xbf16>
    %c5 = arith.constant 5 : index
    %c0_157 = arith.constant 0 : index
    %c0_158 = arith.constant 0 : index
    %c0_159 = arith.constant 0 : index
    %180 = vector.load %arg2[%c5, %c0_157, %c0_158, %c0_159] : memref<8x3x128x128xbf16, #tpu.memory_space<vmem>>, vector<1x1x128x128xbf16>
    %181 = vector.shape_cast %180 : vector<1x1x128x128xbf16> to vector<128x128xbf16>
    %cst_160 = arith.constant dense<0.000000e+00> : vector<34x128xf32>
    %182 = tpu.matmul %179, %181, %cst_160 {dimension_numbers = #tpu.dot_dimension_numbers<[1], [0], [0], [1], [0, 0, 1, 1], [], []>} : vector<34x128xbf16>, vector<128x128xbf16>, vector<34x128xf32> -> vector<34x128xf32>
    %c1_161 = arith.constant 1 : index
    %c0_162 = arith.constant 0 : index
    %183 = vector.load %arg6[%c1_161, %c0_162] : memref<36x128xf32, #tpu.memory_space<vmem>>, vector<34x128xf32>
    %184 = arith.truncf %183 : vector<34x128xf32> to vector<34x128xbf16>
    %c5_163 = arith.constant 5 : index
    %c1_164 = arith.constant 1 : index
    %c0_165 = arith.constant 0 : index
    %c0_166 = arith.constant 0 : index
    %185 = vector.load %arg2[%c5_163, %c1_164, %c0_165, %c0_166] : memref<8x3x128x128xbf16, #tpu.memory_space<vmem>>, vector<1x1x128x128xbf16>
    %186 = vector.shape_cast %185 : vector<1x1x128x128xbf16> to vector<128x128xbf16>
    %cst_167 = arith.constant dense<0.000000e+00> : vector<34x128xf32>
    %187 = tpu.matmul %184, %186, %cst_167 {dimension_numbers = #tpu.dot_dimension_numbers<[1], [0], [0], [1], [0, 0, 1, 1], [], []>} : vector<34x128xbf16>, vector<128x128xbf16>, vector<34x128xf32> -> vector<34x128xf32>
    %188 = arith.addf %182, %187 : vector<34x128xf32>
    %c2_168 = arith.constant 2 : index
    %c0_169 = arith.constant 0 : index
    %189 = vector.load %arg6[%c2_168, %c0_169] : memref<36x128xf32, #tpu.memory_space<vmem>>, vector<34x128xf32>
    %190 = arith.truncf %189 : vector<34x128xf32> to vector<34x128xbf16>
    %c5_170 = arith.constant 5 : index
    %c2_171 = arith.constant 2 : index
    %c0_172 = arith.constant 0 : index
    %c0_173 = arith.constant 0 : index
    %191 = vector.load %arg2[%c5_170, %c2_171, %c0_172, %c0_173] : memref<8x3x128x128xbf16, #tpu.memory_space<vmem>>, vector<1x1x128x128xbf16>
    %192 = vector.shape_cast %191 : vector<1x1x128x128xbf16> to vector<128x128xbf16>
    %cst_174 = arith.constant dense<0.000000e+00> : vector<34x128xf32>
    %193 = tpu.matmul %190, %192, %cst_174 {dimension_numbers = #tpu.dot_dimension_numbers<[1], [0], [0], [1], [0, 0, 1, 1], [], []>} : vector<34x128xbf16>, vector<128x128xbf16>, vector<34x128xf32> -> vector<34x128xf32>
    %194 = arith.addf %188, %193 : vector<34x128xf32>
    %c5_175 = arith.constant 5 : index
    %c0_176 = arith.constant 0 : index
    %c0_177 = arith.constant 0 : index
    %195 = vector.load %arg3[%c5_175, %c0_176, %c0_177] : memref<8x1x128xf32, #tpu.memory_space<vmem>>, vector<1x1x128xf32>
    %196 = vector.shape_cast %195 : vector<1x1x128xf32> to vector<1x128xf32>
    %197 = vector.broadcast %196 : vector<1x128xf32> to vector<34x128xf32>
    %198 = arith.addf %194, %197 : vector<34x128xf32>
    %199 = vector.broadcast %33 : vector<34x1xf32> to vector<34x128xf32>
    %200 = arith.mulf %198, %199 : vector<34x128xf32>
    %201 = arith.addf %145, %200 : vector<34x128xf32>
    %c1_178 = arith.constant 1 : index
    %c0_179 = arith.constant 0 : index
    %202 = vector.load %arg6[%c1_178, %c0_179] : memref<36x128xf32, #tpu.memory_space<vmem>>, vector<34x128xf32>
    tpu.vector_store %arg6[%c1_178, %c0_179], %201 {strides = array<i32>} : memref<36x128xf32, #tpu.memory_space<vmem>>, vector<34x128xf32>,
    %c0_180 = arith.constant 0 : index
    %c0_181 = arith.constant 0 : index
    %203 = vector.load %arg6[%c0_180, %c0_181] : memref<36x128xf32, #tpu.memory_space<vmem>>, vector<34x128xf32>
    %204 = arith.truncf %203 : vector<34x128xf32> to vector<34x128xbf16>
    %c6 = arith.constant 6 : index
    %c0_182 = arith.constant 0 : index
    %c0_183 = arith.constant 0 : index
    %c0_184 = arith.constant 0 : index
    %205 = vector.load %arg2[%c6, %c0_182, %c0_183, %c0_184] : memref<8x3x128x128xbf16, #tpu.memory_space<vmem>>, vector<1x1x128x128xbf16>
    %206 = vector.shape_cast %205 : vector<1x1x128x128xbf16> to vector<128x128xbf16>
    %cst_185 = arith.constant dense<0.000000e+00> : vector<34x128xf32>
    %207 = tpu.matmul %204, %206, %cst_185 {dimension_numbers = #tpu.dot_dimension_numbers<[1], [0], [0], [1], [0, 0, 1, 1], [], []>} : vector<34x128xbf16>, vector<128x128xbf16>, vector<34x128xf32> -> vector<34x128xf32>
    %c1_186 = arith.constant 1 : index
    %c0_187 = arith.constant 0 : index
    %208 = vector.load %arg6[%c1_186, %c0_187] : memref<36x128xf32, #tpu.memory_space<vmem>>, vector<34x128xf32>
    %209 = arith.truncf %208 : vector<34x128xf32> to vector<34x128xbf16>
    %c6_188 = arith.constant 6 : index
    %c1_189 = arith.constant 1 : index
    %c0_190 = arith.constant 0 : index
    %c0_191 = arith.constant 0 : index
    %210 = vector.load %arg2[%c6_188, %c1_189, %c0_190, %c0_191] : memref<8x3x128x128xbf16, #tpu.memory_space<vmem>>, vector<1x1x128x128xbf16>
    %211 = vector.shape_cast %210 : vector<1x1x128x128xbf16> to vector<128x128xbf16>
    %cst_192 = arith.constant dense<0.000000e+00> : vector<34x128xf32>
    %212 = tpu.matmul %209, %211, %cst_192 {dimension_numbers = #tpu.dot_dimension_numbers<[1], [0], [0], [1], [0, 0, 1, 1], [], []>} : vector<34x128xbf16>, vector<128x128xbf16>, vector<34x128xf32> -> vector<34x128xf32>
    %213 = arith.addf %207, %212 : vector<34x128xf32>
    %c2_193 = arith.constant 2 : index
    %c0_194 = arith.constant 0 : index
    %214 = vector.load %arg6[%c2_193, %c0_194] : memref<36x128xf32, #tpu.memory_space<vmem>>, vector<34x128xf32>
    %215 = arith.truncf %214 : vector<34x128xf32> to vector<34x128xbf16>
    %c6_195 = arith.constant 6 : index
    %c2_196 = arith.constant 2 : index
    %c0_197 = arith.constant 0 : index
    %c0_198 = arith.constant 0 : index
    %216 = vector.load %arg2[%c6_195, %c2_196, %c0_197, %c0_198] : memref<8x3x128x128xbf16, #tpu.memory_space<vmem>>, vector<1x1x128x128xbf16>
    %217 = vector.shape_cast %216 : vector<1x1x128x128xbf16> to vector<128x128xbf16>
    %cst_199 = arith.constant dense<0.000000e+00> : vector<34x128xf32>
    %218 = tpu.matmul %215, %217, %cst_199 {dimension_numbers = #tpu.dot_dimension_numbers<[1], [0], [0], [1], [0, 0, 1, 1], [], []>} : vector<34x128xbf16>, vector<128x128xbf16>, vector<34x128xf32> -> vector<34x128xf32>
    %219 = arith.addf %213, %218 : vector<34x128xf32>
    %c6_200 = arith.constant 6 : index
    %c0_201 = arith.constant 0 : index
    %c0_202 = arith.constant 0 : index
    %220 = vector.load %arg3[%c6_200, %c0_201, %c0_202] : memref<8x1x128xf32, #tpu.memory_space<vmem>>, vector<1x1x128xf32>
    %221 = vector.shape_cast %220 : vector<1x1x128xf32> to vector<1x128xf32>
    %222 = vector.broadcast %221 : vector<1x128xf32> to vector<34x128xf32>
    %223 = arith.addf %219, %222 : vector<34x128xf32>
    %c3_203 = arith.constant 3 : index
    %c0_204 = arith.constant 0 : index
    %c0_205 = arith.constant 0 : index
    %224 = vector.load %arg4[%c3_203, %c0_204, %c0_205] : memref<4x1x128xf32, #tpu.memory_space<vmem>>, vector<1x1x128xf32>
    %225 = vector.shape_cast %224 : vector<1x1x128xf32> to vector<1x128xf32>
    %cst_206 = arith.constant 0.000000e+00 : f32
    %226 = vector.broadcast %cst_206 : f32 to vector<34x128xf32>
    %227 = arith.cmpf oge, %223, %226 : vector<34x128xf32>
    %228 = vector.broadcast %225 : vector<1x128xf32> to vector<34x128xf32>
    %229 = arith.mulf %228, %223 : vector<34x128xf32>
    %230 = arith.select %227, %223, %229 : vector<34x128xi1>, vector<34x128xf32>
    %231 = vector.broadcast %33 : vector<34x1xf32> to vector<34x128xf32>
    %232 = arith.mulf %230, %231 : vector<34x128xf32>
    %c1_207 = arith.constant 1 : index
    %c0_208 = arith.constant 0 : index
    %233 = vector.load %arg6[%c1_207, %c0_208] : memref<36x128xf32, #tpu.memory_space<vmem>>, vector<34x128xf32>
    tpu.vector_store %arg6[%c1_207, %c0_208], %232 {strides = array<i32>} : memref<36x128xf32, #tpu.memory_space<vmem>>, vector<34x128xf32>,
    %c0_209 = arith.constant 0 : index
    %c0_210 = arith.constant 0 : index
    %234 = vector.load %arg6[%c0_209, %c0_210] : memref<36x128xf32, #tpu.memory_space<vmem>>, vector<34x128xf32>
    %235 = arith.truncf %234 : vector<34x128xf32> to vector<34x128xbf16>
    %c7 = arith.constant 7 : index
    %c0_211 = arith.constant 0 : index
    %c0_212 = arith.constant 0 : index
    %c0_213 = arith.constant 0 : index
    %236 = vector.load %arg2[%c7, %c0_211, %c0_212, %c0_213] : memref<8x3x128x128xbf16, #tpu.memory_space<vmem>>, vector<1x1x128x128xbf16>
    %237 = vector.shape_cast %236 : vector<1x1x128x128xbf16> to vector<128x128xbf16>
    %cst_214 = arith.constant dense<0.000000e+00> : vector<34x128xf32>
    %238 = tpu.matmul %235, %237, %cst_214 {dimension_numbers = #tpu.dot_dimension_numbers<[1], [0], [0], [1], [0, 0, 1, 1], [], []>} : vector<34x128xbf16>, vector<128x128xbf16>, vector<34x128xf32> -> vector<34x128xf32>
    %c1_215 = arith.constant 1 : index
    %c0_216 = arith.constant 0 : index
    %239 = vector.load %arg6[%c1_215, %c0_216] : memref<36x128xf32, #tpu.memory_space<vmem>>, vector<34x128xf32>
    %240 = arith.truncf %239 : vector<34x128xf32> to vector<34x128xbf16>
    %c7_217 = arith.constant 7 : index
    %c1_218 = arith.constant 1 : index
    %c0_219 = arith.constant 0 : index
    %c0_220 = arith.constant 0 : index
    %241 = vector.load %arg2[%c7_217, %c1_218, %c0_219, %c0_220] : memref<8x3x128x128xbf16, #tpu.memory_space<vmem>>, vector<1x1x128x128xbf16>
    %242 = vector.shape_cast %241 : vector<1x1x128x128xbf16> to vector<128x128xbf16>
    %cst_221 = arith.constant dense<0.000000e+00> : vector<34x128xf32>
    %243 = tpu.matmul %240, %242, %cst_221 {dimension_numbers = #tpu.dot_dimension_numbers<[1], [0], [0], [1], [0, 0, 1, 1], [], []>} : vector<34x128xbf16>, vector<128x128xbf16>, vector<34x128xf32> -> vector<34x128xf32>
    %244 = arith.addf %238, %243 : vector<34x128xf32>
    %c2_222 = arith.constant 2 : index
    %c0_223 = arith.constant 0 : index
    %245 = vector.load %arg6[%c2_222, %c0_223] : memref<36x128xf32, #tpu.memory_space<vmem>>, vector<34x128xf32>
    %246 = arith.truncf %245 : vector<34x128xf32> to vector<34x128xbf16>
    %c7_224 = arith.constant 7 : index
    %c2_225 = arith.constant 2 : index
    %c0_226 = arith.constant 0 : index
    %c0_227 = arith.constant 0 : index
    %247 = vector.load %arg2[%c7_224, %c2_225, %c0_226, %c0_227] : memref<8x3x128x128xbf16, #tpu.memory_space<vmem>>, vector<1x1x128x128xbf16>
    %248 = vector.shape_cast %247 : vector<1x1x128x128xbf16> to vector<128x128xbf16>
    %cst_228 = arith.constant dense<0.000000e+00> : vector<34x128xf32>
    %249 = tpu.matmul %246, %248, %cst_228 {dimension_numbers = #tpu.dot_dimension_numbers<[1], [0], [0], [1], [0, 0, 1, 1], [], []>} : vector<34x128xbf16>, vector<128x128xbf16>, vector<34x128xf32> -> vector<34x128xf32>
    %250 = arith.addf %244, %249 : vector<34x128xf32>
    %c7_229 = arith.constant 7 : index
    %c0_230 = arith.constant 0 : index
    %c0_231 = arith.constant 0 : index
    %251 = vector.load %arg3[%c7_229, %c0_230, %c0_231] : memref<8x1x128xf32, #tpu.memory_space<vmem>>, vector<1x1x128xf32>
    %252 = vector.shape_cast %251 : vector<1x1x128xf32> to vector<1x128xf32>
    %253 = vector.broadcast %252 : vector<1x128xf32> to vector<34x128xf32>
    %254 = arith.addf %250, %253 : vector<34x128xf32>
    %255 = vector.broadcast %33 : vector<34x1xf32> to vector<34x128xf32>
    %256 = arith.mulf %254, %255 : vector<34x128xf32>
    %257 = arith.addf %201, %256 : vector<34x128xf32>
    %c1_232 = arith.constant 1 : index
    %c0_233 = arith.constant 0 : index
    %258 = vector.load %arg6[%c1_232, %c0_233] : memref<36x128xf32, #tpu.memory_space<vmem>>, vector<34x128xf32>
    tpu.vector_store %arg6[%c1_232, %c0_233], %257 {strides = array<i32>} : memref<36x128xf32, #tpu.memory_space<vmem>>, vector<34x128xf32>,
    %c1_234 = arith.constant 1 : index
    %c0_235 = arith.constant 0 : index
    %259 = vector.load %arg6[%c1_234, %c0_235] : memref<36x128xf32, #tpu.memory_space<vmem>>, vector<16x128xf32>
    %c0_236 = arith.constant 0 : index
    %c0_237 = arith.constant 0 : index
    %c0_238 = arith.constant 0 : index
    %260 = vector.load %arg5[%c0_236, %c0_237, %c0_238] : memref<2x16x128xf32, #tpu.memory_space<vmem>>, vector<1x16x128xf32>
    %261 = vector.shape_cast %260 : vector<1x16x128xf32> to vector<16x128xf32>
    %262 = vector.shape_cast %259 : vector<16x128xf32> to vector<1x16x128xf32>
    tpu.vector_store %arg5[%c0_236, %c0_237, %c0_238], %262 {strides = array<i32>} : memref<2x16x128xf32, #tpu.memory_space<vmem>>, vector<1x16x128xf32>,
    %c19_239 = arith.constant 19 : index
    %c0_240 = arith.constant 0 : index
    %263 = vector.load %arg6[%c19_239, %c0_240] : memref<36x128xf32, #tpu.memory_space<vmem>>, vector<16x128xf32>
    %c1_241 = arith.constant 1 : index
    %c0_242 = arith.constant 0 : index
    %c0_243 = arith.constant 0 : index
    %264 = vector.load %arg5[%c1_241, %c0_242, %c0_243] : memref<2x16x128xf32, #tpu.memory_space<vmem>>, vector<1x16x128xf32>
    %265 = vector.shape_cast %264 : vector<1x16x128xf32> to vector<16x128xf32>
    %266 = vector.shape_cast %263 : vector<16x128xf32> to vector<1x16x128xf32>
    tpu.vector_store %arg5[%c1_241, %c0_242, %c0_243], %266 {strides = array<i32>} : memref<2x16x128xf32, #tpu.memory_space<vmem>>, vector<1x16x128xf32>,
    return
  }
  func.func @transform_0(%arg0: i32) -> (i32, i32, i32) {
    %c0_i32 = arith.constant 0 : i32
    %c0_i32_0 = arith.constant 0 : i32
    %c0_i32_1 = arith.constant 0 : i32
    return %arg0, %c0_i32, %c0_i32_0 : i32, i32, i32
  }
  func.func @transform_1(%arg0: i32) -> (i32, i32, i32, i32) {
    %c0_i32 = arith.constant 0 : i32
    %c0_i32_0 = arith.constant 0 : i32
    %c0_i32_1 = arith.constant 0 : i32
    %c0_i32_2 = arith.constant 0 : i32
    %c0_i32_3 = arith.constant 0 : i32
    return %c0_i32, %c0_i32_0, %c0_i32_1, %c0_i32_2 : i32, i32, i32, i32
  }
  func.func @transform_2(%arg0: i32) -> (i32, i32, i32) {
    %c0_i32 = arith.constant 0 : i32
    %c0_i32_0 = arith.constant 0 : i32
    %c0_i32_1 = arith.constant 0 : i32
    %c0_i32_2 = arith.constant 0 : i32
    return %c0_i32, %c0_i32_0, %c0_i32_1 : i32, i32, i32
  }
  func.func @transform_3(%arg0: i32) -> (i32, i32, i32) {
    %c0_i32 = arith.constant 0 : i32
    %c0_i32_0 = arith.constant 0 : i32
    %c0_i32_1 = arith.constant 0 : i32
    %c0_i32_2 = arith.constant 0 : i32
    return %c0_i32, %c0_i32_0, %c0_i32_1 : i32, i32, i32
  }
  func.func @transform_4(%arg0: i32) -> (i32, i32, i32) {
    %c0_i32 = arith.constant 0 : i32
    %c0_i32_0 = arith.constant 0 : i32
    %c0_i32_1 = arith.constant 0 : i32
    return %arg0, %c0_i32, %c0_i32_0 : i32, i32, i32
  }
}

</mosaic_0001>

<bundles_post_ra>
// kernel: sfm_sgn_res_blocks.1
= control target key start
LH: loop header
LB: loop body
LE: loop exit
PB: predicated region body
PF: predicated region fallthrough
CT: control target
= control target key end

     0   :  { %9 = vsyncpa [#allocation4], 0  ;;  %s3890_s18 = smov [#allocation3]   ;;  %s3891_s20 = smov 64   ;;  %s4226_s0 = inlined_call_operand.vmem [shape: f32[2,16,128], index: 0, kind: input, shape index: {}]   ;;  %s4227_s1 = inlined_call_operand.hbm [shape: bf16[8,3,128,128], index: 1, kind: input, shape index: {}]   ;;  %s4228_s2 = inlined_call_operand.vmem [shape: f32[8,1,128], index: 2, kind: input, shape index: {}]   ;;  %s4229_s3 = inlined_call_operand.vmem [shape: f32[4,1,128], index: 3, kind: input, shape index: {}]   ;;  %s4230_s4 = inlined_call_operand.vmem [shape: f32[2,16,128], index: 4, kind: output, shape index: {}]  }
   0x1   :  { %s16_s17 = sshll.u32 %s4227_s1, 4  ;;  %s18_s19 = sshll.u32 %s3890_s18, 4  ;;  %s17_s17 = int_to_ptr.hbm [resolvable:$true] %s16_s17  ;;  %s19_s19 = int_to_ptr.vmem [resolvable:$true] %s18_s19 }
   0x2   :  { %s3892_s21 = smov 4  }
   0x3   :  { %24 = dma.hbm_to_vmem [thread:$0]  %s17_s17, 24576, %s19_s19, [#allocation4], %s3891_s20, %s3891_s20, %s3892_s21  }
   0x4   :  { %3888 = dma.done.wait [#allocation4], 24576  }
   0x5   :  { %3889 = vsyncadd [#allocation4], 4294942720  ;;  %v3893_v0 = vmov 0.0   ;;  %v3670_v1 = vld [vmem:[#allocation3 + $0x78] sm:$0xff]  ;;  %v3669_v4 = vld [vmem:[#allocation3 + $0x70] sm:$0xff]  ;;  %v47_v54 = vlaneseq }
   0x6   :  { %33 = vst [vmem:[#allocation2] sm:$0xff] %v3893_v0  ;;  %v3662_v2 = vld [vmem:[#allocation3 + $0x38] sm:$0xff]  ;;  %350 = vmatpush.bf16.msra.mxu0 %v3670_v1  ;;  %v3661_v5 = vld [vmem:[#allocation3 + $0x30] sm:$0xff]  ;;  %v3668_v7 = vld [vmem:[#allocation3 + $0x68] sm:$0xff] }
   0x7   :  { %34 = vst [vmem:[#allocation2 + $0x8] sm:$0xff] %v3893_v0  ;;  %v3678_v3 = vld [vmem:[#allocation3 + $0xb8] sm:$0xff]  ;;  %421 = vmatpush.bf16.msra.mxu1 %v3662_v2  ;;  %v3677_v6 = vld [vmem:[#allocation3 + $0xb0] sm:$0xff]  ;;  %v3660_v8 = vld [vmem:[#allocation3 + $0x28] sm:$0xff]  ;;  %v3958_v55 = vshrl.u32 %v47_v54, 7 }
   0x8   :  { %35 = vst [vmem:[#allocation2 + $0x10] sm:$0xff] %v3893_v0  ;;  %517 = vmatpush.bf16.msra.mxu2 %v3678_v3  ;;  %v3676_v9 = vld [vmem:[#allocation3 + $0xa8] sm:$0xff]  ;;  %v3667_v10 = vld [vmem:[#allocation3 + $0x60] sm:$0xff]  ;;  %v3931_v11 = vld [vmem:[%s4226_s0] sm:$0xff] }
   0x9   :  { %36 = vst [vmem:[#allocation2 + $0x18] sm:$0xff] %v3893_v0  ;;  %v3936_v12 = vld [vmem:[%s4226_s0 + $0x8] sm:$0xff]  ;;  %v2868_v13 = vld [vmem:[%s4226_s0 + $0x10] sm:$0xff]  ;;  %v2869_v14 = vld [vmem:[%s4226_s0 + $0x18] sm:$0xff]  ;;  %v3961_v56 = vadd.s32 1, %v3958_v55  ;;  %v49_v63 = vadd.s32 8, %v3958_v55 }
   0xa   :  { %37 = vst [vmem:[#allocation2 + $0x20] sm:$0xf] %v3893_v0  ;;  %351 = vmatpush.bf16.msra.mxu0 %v3669_v4  ;;  %v3659_v15 = vld [vmem:[#allocation3 + $0x20] sm:$0xff]  ;;  %v3666_v17 = vld [vmem:[#allocation3 + $0x58] sm:$0xff]  ;;  %v3665_v20 = vld [vmem:[#allocation3 + $0x50] sm:$0xff]  ;;  %v282_v33 = vpack.c.bf16 %v3936_v12, %v3931_v11 }
   0xb   :  { %422 = vmatpush.bf16.msra.mxu1 %v3661_v5  ;;  %40 = vst [vmem:[#allocation2 + $0x1] sm:$0xff] %v3931_v11  ;;  %v3675_v16 = vld [vmem:[#allocation3 + $0xa0] sm:$0xff]  ;;  %v3658_v18 = vld [vmem:[#allocation3 + $0x18] sm:$0xff]  ;;  %v3657_v21 = vld [vmem:[#allocation3 + $0x10] sm:$0xff]  ;;  %v61_v57 = vand.u32 65535, %v3961_v56  ;;  %v62_v58 = vshrl.u32 %v3961_v56, 16 }
   0xc   :  { %518 = vmatpush.bf16.msra.mxu2 %v3677_v6  ;;  %41 = vst [vmem:[#allocation2 + $0x9] sm:$0xff] %v3936_v12  ;;  %v3674_v19 = vld [vmem:[#allocation3 + $0x98] sm:$0xff]  ;;  %v3673_v22 = vld [vmem:[#allocation3 + $0x90] sm:$0xff]  ;;  %v3664_v23 = vld [vmem:[#allocation3 + $0x48] sm:$0xff]  ;;  %v3966_v5 = vadd.s32 1, %v49_v63  ;;  %v3894_v6 = vmov 0  }
   0xd   :  { %45 = vst [vmem:[#allocation2 + $0x13] sm:$0xff] %v2868_v13  ;;  %v3656_v24 = vld [vmem:[#allocation3 + $0x8] sm:$0xff]  ;;  %v3663_v26 = vld [vmem:[#allocation3 + $0x40] sm:$0xff]  ;;  %v3686_v36 = vld [vmem:[#allocation3 + $0xf8] sm:$0xff]  ;;  %v65_v59 = vmul.u32 58254, %v61_v57  ;;  %v64_v60 = vmul.u32 14564, %v61_v57 }
   0xe   :  { %352 = vmatpush.bf16.msra.mxu0 %v3668_v7  ;;  %46 = vst [vmem:[#allocation2 + $0x1b] sm:$0xff] %v2869_v14  ;;  %v3672_v25 = vld [vmem:[#allocation3 + $0x88] sm:$0xff]  ;;  %v3655_v27 = vld [vmem:[#allocation3] sm:$0xff]  ;;  %v3702_v37 = vld [vmem:[#allocation3 + $0x178] sm:$0xff]  ;;  %v66_v61 = vmul.u32 14564, %v62_v58  ;;  %v67_v3 = vmul.u32 58254, %v62_v58 }
   0xf   :  { %423 = vmatpush.bf16.msra.mxu1 %v3660_v8  ;;  %v3671_v30 = vld [vmem:[#allocation3 + $0x80] sm:$0xff]  ;;  %v3685_v38 = vld [vmem:[#allocation3 + $0xf0] sm:$0xff]  ;;  %v68_v62 = vshll.u32 %v65_v59, 16  ;;  %v3694_v2 = vld [vmem:[#allocation3 + $0x138] sm:$0xff]  ;;  %v90_v8 = vand.u32 65535, %v3966_v5 }
  0x10   :  { %519 = vmatpush.bf16.msra.mxu2 %v3676_v9  ;;  %v70_v1 = vshll.u32 %v66_v61, 16  ;;  %681 = vmatpush.bf16.msra.mxu3 %v3694_v2  ;;  %v91_v9 = vshrl.u32 %v3966_v5, 16  ;;  %v3693_v13 = vld [vmem:[#allocation3 + $0x130] sm:$0xff]  ;;  %v3683_v58 = vld [vmem:[#allocation3 + $0xe0] sm:$0xff] }
  0x11   :  { %vm72_vm0 = vc.u32 %v64_v60, %v68_v62  ;;  %v74_v4 = vadd.s32 %v68_v62, %v64_v60  ;;  %v94_v14 = vmul.u32 58254, %v90_v8 }
  0x12   :  { %353 = vmatpush.bf16.msra.mxu0 %v3667_v10  ;;  %v258_v29 = vld [vmem:[#allocation2] sm:$0xff]  ;;  %v73_v7 = vsel %vm72_vm0, 1, %v3894_v6 }
  0x13   :  { %424 = vmatpush.bf16.msra.mxu1 %v3659_v15  ;;  %v259_v28 = vld [vmem:[#allocation2 + $0x8] sm:$0xff]  ;;  %vm76_vm1 = vc.u32 %v74_v4, %v70_v1  ;;  %v75_v10 = vadd.s32 %v73_v7, %v67_v3  ;;  %v52_v4 = vadd.s32 32, %v3958_v55  ;;  %v3700_v7 = vld [vmem:[#allocation3 + $0x168] sm:$0xff] }
  0x14   :  { %520 = vmatpush.bf16.msra.mxu2 %v3675_v16  ;;  %v444_v31 = vld [vmem:[#allocation2 + $0x2] sm:$0xff]  ;;  %v445_v32 = vld [vmem:[#allocation2 + $0xa] sm:$0xff]  ;;  %v263_v34 = vpack.c.bf16 %v259_v28, %v258_v29  ;;  %v446_v43 = vld [vmem:[#allocation2 + $0x12] sm:$0xff]  ;;  %v77_v15 = vsel %vm76_vm1, 1, %v3894_v6  ;;  %v93_v16 = vmul.u32 14564, %v90_v8  ;;  %682 = vmatpush.bf16.msra.mxu3 %v3693_v13  ;;  %v96_v29 = vmul.u32 58254, %v91_v9 }
  0x15   :  { %v449_v35 = vpack.c.bf16 %v445_v32, %v444_v31  ;;  %v3948_v39 = vld [vmem:[#allocation2 + $0x11] sm:$0xff]  ;;  %v3950_v40 = vld [vmem:[#allocation2 + $0x19] sm:$0xff]  ;;  %v3954_v49 = vld [vmem:[#allocation2 + $0x21] sm:$0x3] }
  0x16   :  { %354 = vmatpush.bf16.msra.mxu0 %v3666_v17  ;;  %v260_v41 = vld [vmem:[#allocation2 + $0x10] sm:$0xff]  ;;  %v261_v42 = vld [vmem:[#allocation2 + $0x18] sm:$0xff]  ;;  %v283_v45 = vpack.c.bf16 %v3950_v40, %v3948_v39  ;;  %v262_v48 = vld [vmem:[#allocation2 + $0x20] sm:$0x3]  ;;  %v284_v51 = vpack.c.bf16 %v3954_v49, %v3954_v49  ;;  %v3972_v17 = vmul.u32 14564, %v91_v9 }
  0x17   :  { %425 = vmatpush.bf16.msra.mxu1 %v3658_v18  ;;  %v447_v44 = vld [vmem:[#allocation2 + $0x1a] sm:$0xff]  ;;  %v264_v46 = vpack.c.bf16 %v261_v42, %v260_v41  ;;  %v448_v50 = vld [vmem:[#allocation2 + $0x22] sm:$0x3]  ;;  %v265_v52 = vpack.c.bf16 %v262_v48, %v262_v48  ;;  %v50_v18 = vadd.s32 16, %v3958_v55  ;;  %v51_v42 = vadd.s32 24, %v3958_v55 }
  0x18   :  { %521 = vmatpush.bf16.msra.mxu2 %v3674_v19  ;;  %v450_v47 = vpack.c.bf16 %v447_v44, %v446_v43  ;;  %v451_v53 = vpack.c.bf16 %v448_v50, %v448_v50  ;;  %v97_v19 = vshll.u32 %v94_v14, 16  ;;  %v98_v50 = vshrl.u32 %v94_v14, 16  ;;  %v3682_v13 = vld [vmem:[#allocation3 + $0xd8] sm:$0xff]  ;;  %v3688_v14 = vld [vmem:[#allocation3 + $0x108] sm:$0xff] }
  0x19   :  { %v3989_v48 = vadd.s32 1, %v51_v42 }
  0x1a   :  { %355 = vmatpush.bf16.msra.mxu0 %v3665_v20  ;;  %v3701_v20 = vld [vmem:[#allocation3 + $0x170] sm:$0xff]  ;;  %vm101_vm2 = vc.u32 %v93_v16, %v97_v19 }
  0x1b   :  { %426 = vmatpush.bf16.msra.mxu1 %v3657_v21  ;;  %v3684_v21 = vld [vmem:[#allocation3 + $0xe8] sm:$0xff]  ;;  %v148_v54 = vand.u32 65535, %v3989_v48  ;;  %v149_v60 = vshrl.u32 %v3989_v48, 16 }
  0x1c   :  { %522 = vmatpush.bf16.msra.mxu2 %v3673_v22  ;;  %v69_v22 = vshrl.u32 %v65_v59, 16  ;;  %v3689_v59 = vld [vmem:[#allocation3 + $0x110] sm:$0xff] }
  0x1d   :  { %v151_v62 = vmul.u32 14564, %v148_v54  ;;  %v3995_v63 = vmul.u32 58254, %v148_v54  ;;  %v3997_v3 = vmul.u32 14564, %v149_v60 }
  0x1e   :  { %356 = vmatpush.bf16.msra.mxu0 %v3664_v23  ;;  %v3975_v23 = vadd.s32 1, %v50_v18  ;;  %v4003_v18 = vadd.s32 1, %v52_v4 }
  0x1f   :  { %427 = vmatpush.bf16.msra.mxu1 %v3656_v24  ;;  %v79_v24 = vadd.s32 %v77_v15, %v75_v10  ;;  %v155_v9 = vshll.u32 %v3995_v63, 16  ;;  %v3699_v15 = vld [vmem:[#allocation3 + $0x160] sm:$0xff] }
  0x20   :  { %523 = vmatpush.bf16.msra.mxu2 %v3672_v25  ;;  %v3692_v25 = vld [vmem:[#allocation3 + $0x128] sm:$0xff]  ;;  %v119_v28 = vand.u32 65535, %v3975_v23  ;;  %v120_v31 = vshrl.u32 %v3975_v23, 16 }
  0x21   :  { %683 = vmatpush.bf16.msra.mxu3 %v3692_v25  ;;  %vm159_vm6 = vc.u32 %v151_v62, %v155_v9  ;;  %v3687_v25 = vld [vmem:[#allocation3 + $0x100] sm:$0xff] }
  0x22   :  { %357 = vmatpush.bf16.msra.mxu0 %v3663_v26  ;;  %v99_v26 = vshll.u32 %v3972_v17, 16  ;;  %v3981_v32 = vmul.u32 58254, %v119_v28 }
  0x23   :  { %428 = vmatpush.bf16.msra.mxu1 %v3655_v27  ;;  %v103_v27 = vadd.s32 %v97_v19, %v93_v16  ;;  %v157_v16 = vshll.u32 %v3997_v3, 16 }
  0x24   :  { %524 = vmatpush.bf16.msra.mxu2 %v3671_v30  ;;  %v102_v30 = vsel %vm101_vm2, 1, %v3894_v6  ;;  %v127_v55 = vshrl.u32 %v3981_v32, 16 }
  0x25   :  { %358 = vmatmul.bf16.vlgmr.msra.gmra.mxu0 %v282_v33  ;;  %v71_v33 = vshrl.u32 %v66_v61, 16  ;;  %vm105_vm3 = vc.u32 %v103_v27, %v99_v26  ;;  %v104_v41 = vadd.s32 %v102_v30, %v96_v29  ;;  %v100_v61 = vshrl.u32 %v3972_v17, 16 }
  0x26   :  { %429 = vmatmul.bf16.vlgmr.msra.gmra.mxu1 %v263_v34  ;;  %752 = vmatpush.bf16.msrb.mxu0 %v3686_v36  ;;  %v80_v34 = vadd.s32 %v79_v24, %v69_v22  ;;  %v122_v36 = vmul.u32 14564, %v119_v28  ;;  %v106_v43 = vsel %vm105_vm3, 1, %v3894_v6  ;;  %v161_v17 = vadd.s32 %v155_v9, %v151_v62  ;;  %v3681_v22 = vld [vmem:[#allocation3 + $0xd0] sm:$0xff] }
  0x27   :  { %525 = vmatmul.bf16.vlgmr.msra.gmra.mxu2 %v449_v35  ;;  %848 = vmatpush.bf16.msrb.mxu1 %v3702_v37  ;;  %v3691_v35 = vld [vmem:[#allocation3 + $0x120] sm:$0xff]  ;;  %v3983_v37 = vmul.u32 14564, %v120_v31  ;;  %v160_v24 = vsel %vm159_vm6, 1, %v3894_v6  ;;  %v177_v26 = vand.u32 65535, %v4003_v18  ;;  %v178_v27 = vshrl.u32 %v4003_v18, 16 }
  0x28   :  { %684 = vmatpush.bf16.msra.mxu3 %v3691_v35  ;;  %v81_v44 = vadd.s32 %v80_v34, %v71_v33  ;;  %vm163_vm7 = vc.u32 %v161_v17, %v157_v16  ;;  %v3698_v33 = vld [vmem:[#allocation3 + $0x158] sm:$0xff] }
  0x29   :  { %v129_v30 = vshrl.u32 %v3983_v37, 16  ;;  %v180_v35 = vmul.u32 14564, %v177_v26 }
  0x2a   :  { %753 = vmatpush.bf16.msrb.mxu0 %v3685_v38  ;;  %v126_v38 = vshll.u32 %v3981_v32, 16  ;;  %v82_v57 = vshrl.u32 %v81_v44, 4  ;;  %v4011_v32 = vmul.u32 58254, %v177_v26  ;;  %v156_v44 = vshrl.u32 %v3995_v63, 16  ;;  %v3696_v63 = vld [vmem:[#allocation3 + $0x148] sm:$0xff] }
  0x2b   :  { %849 = vmatpush.bf16.msrb.mxu1 %v3701_v20 }
  0x2c   :  { %vm130_vm4 = vc.u32 %v122_v36, %v126_v38  ;;  %v83_v10 = vmul.u32 18, %v82_v57 }
  0x2e   :  { %754 = vmatpush.bf16.msrb.mxu0 %v3684_v21  ;;  %v154_v21 = vmul.u32 58254, %v149_v60  ;;  %v84_v28 = vsub.s32 %v3961_v56, %v83_v10  ;;  %v184_v56 = vshll.u32 %v4011_v32, 16  ;;  %v158_v60 = vshrl.u32 %v3997_v3, 16  ;;  %v4029_v3 = vld [vmem:[%s4228_s2] ss:$0 sm:$0xff]  ;;  %v3695_v10 = vld [vmem:[#allocation3 + $0x140] sm:$0xff] }
  0x2f   :  { %850 = vmatpush.bf16.msrb.mxu1 %v3700_v7 }
  0x30   :  { %v162_v34 = vadd.s32 %v160_v24, %v154_v21  ;;  %vm203_vm8 = vcmp.ne.s32.totalorder %v84_v28, 0  ;;  %vm208_vm9 = vcmp.lt.s32.totalorder %v84_v28, 0  ;;  %vm188_vm10 = vc.u32 %v180_v35, %v184_v56 }
  0x31   :  { %vm213_vm11 = vmand %vm208_vm9, %vm203_vm8 }
  0x32   :  { %755 = vmatpush.bf16.msrb.mxu0 %v3683_v58 }
  0x33   :  { %851 = vmatpush.bf16.msrb.mxu1 %v3699_v15  ;;  %v4034_v15 = vld [vmem:[%s4229_s3] ss:$0 sm:$0xff] }
  0x35   :  { %363 = vmatmul.bf16.gmra.mxu0 %v283_v45  ;;  %v3690_v45 = vld [vmem:[#allocation3 + $0x118] sm:$0xff] }
  0x36   :  { %434 = vmatmul.bf16.gmra.mxu1 %v264_v46  ;;  %v128_v46 = vshll.u32 %v3983_v37, 16  ;;  %685 = vmatpush.bf16.msra.mxu3 %v3690_v45 }
  0x37   :  { %530 = vmatmul.bf16.gmra.mxu2 %v450_v47  ;;  %v132_v47 = vadd.s32 %v126_v38, %v122_v36  ;;  %756 = vmatpush.bf16.msrb.mxu0 %v3682_v13  ;;  %v4013_v36 = vmul.u32 14564, %v178_v27  ;;  %v3680_v38 = vld [vmem:[#allocation3 + $0xc8] sm:$0xff] }
  0x38   :  { %852 = vmatpush.bf16.msrb.mxu1 %v3698_v33 }
  0x39   :  { %vm134_vm5 = vc.u32 %v132_v47, %v128_v46  ;;  %v183_v46 = vmul.u32 58254, %v178_v27  ;;  %v3697_v47 = vld [vmem:[#allocation3 + $0x150] sm:$0xff] }
  0x3a   :  { %686 = vmatpush.bf16.msra.mxu3 %v3689_v59  ;;  %v135_v8 = vsel %vm134_vm5, 1, %v3894_v6 }
  0x3b   :  { %757 = vmatpush.bf16.msrb.mxu0 %v3681_v22 }
  0x3c   :  { %853 = vmatpush.bf16.msrb.mxu1 %v3697_v47 }
  0x3e   :  { %687 = vmatpush.bf16.msra.mxu3 %v3688_v14 }
  0x3f   :  { %758 = vmatpush.bf16.msrb.mxu0 %v3680_v38 }
  0x40   :  { %854 = vmatpush.bf16.msrb.mxu1 %v3696_v63 }
  0x42   :  { %688 = vmatpush.bf16.msra.mxu3 %v3687_v25 }
  0x44   :  { %855 = vmatpush.bf16.msrb.mxu1 %v3695_v10 }
  0x45   :  { %368 = vmatmul.bf16.gmra.mxu0 %v284_v51  ;;  %v108_v51 = vadd.s32 %v106_v43, %v104_v41  ;;  %v164_v41 = vsel %vm163_vm7, 1, %v3894_v6  ;;  %v186_v43 = vshll.u32 %v4013_v36, 16 }
  0x46   :  { %439 = vmatmul.bf16.gmra.mxu1 %v265_v52  ;;  %v125_v52 = vmul.u32 58254, %v120_v31  ;;  %v166_v45 = vadd.s32 %v164_v41, %v162_v34 }
  0x47   :  { %535 = vmatmul.bf16.gmra.mxu2 %v451_v53  ;;  %v131_v53 = vsel %vm130_vm4, 1, %v3894_v6  ;;  %v109_v1 = vadd.s32 %v108_v51, %v98_v50  ;;  %v3679_v50 = vld [vmem:[#allocation3 + $0xc0] sm:$0xff]  ;;  %v189_v51 = vsel %vm188_vm10, 1, %v3894_v6 }
  0x48   :  { %v133_v2 = vadd.s32 %v131_v53, %v125_v52  ;;  %v190_v52 = vadd.s32 %v184_v56, %v180_v35  ;;  %v218_v53 = vadd.s32 18, %v84_v28  ;;  %759 = vmatpush.bf16.msrb.mxu0 %v3679_v50  ;;  %v191_v62 = vadd.s32 %v189_v51, %v183_v46 }
  0x49   :  { %v110_v19 = vadd.s32 %v109_v1, %v100_v61  ;;  %v167_v61 = vadd.s32 %v166_v45, %v156_v44 }
  0x4a   :  { %v137_v20 = vadd.s32 %v135_v8, %v133_v2  ;;  %vm192_vm12 = vc.u32 %v190_v52, %v186_v43  ;;  %v223_v2 = vsel %vm213_vm11, %v218_v53, %v84_v28 }
  0x4b   :  { %v111_v29 = vshrl.u32 %v110_v19, 4  ;;  %v193_v1 = vsel %vm192_vm12, 1, %v3894_v6  ;;  %v168_v8 = vadd.s32 %v167_v61, %v158_v60  ;;  %vm228_vm15 = vcmp.ge.s32.totalorder %v223_v2, 1 }
  0x4c   :  { %v138_v31 = vadd.s32 %v137_v20, %v127_v55  ;;  %v195_v9 = vadd.s32 %v193_v1, %v191_v62  ;;  %vm233_vm0 = vcmp.le.s32.totalorder %v223_v2, 16  ;;  %v187_v20 = vshrl.u32 %v4013_v36, 16 }
  0x4d   :  { %v112_v42 = vmul.u32 18, %v111_v29  ;;  %vm238_vm2 = vmand %vm228_vm15, %vm233_vm0  ;;  %v169_v55 = vshrl.u32 %v168_v8, 4 }
  0x4e   :  { %v139_v37 = vadd.s32 %v138_v31, %v129_v30  ;;  %v4042_v25 = vsel %vm238_vm2, 1.0, %v3893_v0 }
  0x4f   :  { %v113_v58 = vsub.s32 %v3966_v5, %v112_v42  ;;  %v185_v5 = vshrl.u32 %v4011_v32, 16  ;;  %v170_v27 = vmul.u32 18, %v169_v55 }
  0x50   :  { %v140_v59 = vshrl.u32 %v139_v37, 4 }
  0x51   :  { %vm204_vm13 = vcmp.ne.s32.totalorder %v113_v58, 0  ;;  %vm209_vm14 = vcmp.lt.s32.totalorder %v113_v58, 0  ;;  %v219_v6 = vadd.s32 18, %v113_v58  ;;  %v196_v21 = vadd.s32 %v195_v9, %v185_v5 }
  0x52   :  { %v141_v7 = vmul.u32 18, %v140_v59  ;;  %vm214_vm1 = vmand %vm209_vm14, %vm204_vm13  ;;  %v171_v36 = vsub.s32 %v3989_v48, %v170_v27 }
  0x53   :  { %v224_v24 = vsel %vm214_vm1, %v219_v6, %v113_v58  ;;  %v197_v28 = vadd.s32 %v196_v21, %v187_v20 }
  0x54   :  { %v142_v19 = vsub.s32 %v3975_v23, %v141_v7  ;;  %vm229_vm6 = vcmp.ge.s32.totalorder %v224_v24, 1  ;;  %vm234_vm7 = vcmp.le.s32.totalorder %v224_v24, 16  ;;  %vm206_vm11 = vcmp.ne.s32.totalorder %v171_v36, 0 }
  0x55   :  { %vm239_vm9 = vmand %vm229_vm6, %vm234_vm7  ;;  %v198_v38 = vshrl.u32 %v197_v28, 4  ;;  %vm211_vm12 = vcmp.lt.s32.totalorder %v171_v36, 0  ;;  %v221_v47 = vadd.s32 18, %v171_v36 }
  0x56   :  { %vm205_vm4 = vcmp.ne.s32.totalorder %v142_v19, 0  ;;  %vm210_vm5 = vcmp.lt.s32.totalorder %v142_v19, 0  ;;  %v220_v32 = vadd.s32 18, %v142_v19  ;;  %v4049_v42 = vsel %vm239_vm9, 1.0, %v3893_v0  ;;  %vm216_vm15 = vmand %vm211_vm12, %vm206_vm11 }
  0x57   :  { %vm215_vm8 = vmand %vm210_vm5, %vm205_vm4  ;;  %v199_v44 = vmul.u32 18, %v198_v38  ;;  %v226_v58 = vsel %vm216_vm15, %v221_v47, %v171_v36 }
  0x58   :  { %v225_v56 = vsel %vm215_vm8, %v220_v32, %v142_v19  ;;  %vm231_vm4 = vcmp.ge.s32.totalorder %v226_v58, 1  ;;  %vm236_vm5 = vcmp.le.s32.totalorder %v226_v58, 16  ;;  %v3724_v58 = vld [vmem:[#allocation3 + $0x228] sm:$0xff] }
  0x59   :  { %vm230_vm13 = vcmp.ge.s32.totalorder %v225_v56, 1  ;;  %vm235_vm14 = vcmp.le.s32.totalorder %v225_v56, 16  ;;  %vm241_vm7 = vmand %vm231_vm4, %vm236_vm5 }
  0x5a   :  { %vm240_vm0 = vmand %vm230_vm13, %vm235_vm14  ;;  %v4062_v6 = vsel %vm241_vm7, 1.0, %v3893_v0 }
  0x5b   :  { %v4056_v59 = vsel %vm240_vm0, 1.0, %v3893_v0 }
  0xa2   :  { %v359_v54 = vpop.f32.mrf.mxu0 }
  0xa3   :  { %v430_v57 = vpop.f32.mrf.mxu1 }
  0xa4   :  { %v431_v4 = vadd.f32 %v430_v57, %v359_v54  ;;  %v200_v54 = vsub.s32 %v4003_v18, %v199_v44 }
  0xa6   :  { %vm207_vm2 = vcmp.ne.s32.totalorder %v200_v54, 0  ;;  %v222_v18 = vadd.s32 18, %v200_v54 }
  0xaa   :  { %v526_v13 = vpop.f32.mrf.mxu2  ;;  %v361_v16 = vpop.f32.mrf.mxu0 }
  0xab   :  { %v540_v14 = vadd.f32 %v526_v13, %v431_v4  ;;  %v432_v17 = vpop.f32.mrf.mxu1 }
  0xac   :  { %v433_v30 = vadd.f32 %v432_v17, %v361_v16 }
  0xad   :  { %v549_v22 = vadd.f32 %v4029_v3, %v540_v14 }
  0xaf   :  { %vm555_vm3 = vcmp.ge.f32.partialorder %v549_v22, 0.0  ;;  %v563_v26 = vmul.f32 %v4034_v15, %v549_v22 }
  0xb1   :  { %v568_v29 = vsel %vm555_vm3, %v549_v22, %v563_v26  ;;  %vm212_vm3 = vcmp.lt.s32.totalorder %v200_v54, 0 }
  0xb2   :  { %v573_v23 = vmul.f32 %v4042_v25, %v568_v29  ;;  %v528_v31 = vpop.f32.mrf.mxu2  ;;  %v364_v34 = vpop.f32.mrf.mxu0  ;;  %vm217_vm6 = vmand %vm212_vm3, %vm207_vm2 }
  0xb3   :  { %v541_v33 = vadd.f32 %v528_v31, %v433_v30  ;;  %v435_v35 = vpop.f32.mrf.mxu1  ;;  %v227_v13 = vsel %vm217_vm6, %v222_v18, %v200_v54  ;;  %v3718_v30 = vld [vmem:[#allocation3 + $0x1f8] sm:$0xff]  ;;  %v3715_v54 = vld [vmem:[#allocation3 + $0x1e0] sm:$0xff]  ;;  %v3705_v18 = vld [vmem:[#allocation3 + $0x190] sm:$0xff] }
  0xb4   :  { %578 = vst [vmem:[#allocation2 + $0x1] sm:$0xff] %v573_v23  ;;  %v436_v43 = vadd.f32 %v435_v35, %v364_v34  ;;  %vm232_vm9 = vcmp.ge.s32.totalorder %v227_v13, 1  ;;  %999 = vmatpush.bf16.msrb.mxu2 %v3718_v30  ;;  %v3717_v34 = vld [vmem:[#allocation3 + $0x1f0] sm:$0xff] }
  0xb5   :  { %v550_v41 = vadd.f32 %v4029_v3, %v541_v33  ;;  %v3726_v33 = vld [vmem:[#allocation3 + $0x238] sm:$0xff]  ;;  %v3709_v35 = vld [vmem:[#allocation3 + $0x1b0] sm:$0xff] }
  0xb6   :  { %1166 = vmatpush.bf16.msra.mxu0 %v3726_v33 }
  0xb7   :  { %vm556_vm10 = vcmp.ge.f32.partialorder %v550_v41, 0.0  ;;  %v564_v37 = vmul.f32 %v4034_v15, %v550_v41 }
  0xb8   :  { %1000 = vmatpush.bf16.msrb.mxu2 %v3717_v34 }
  0xb9   :  { %v569_v45 = vsel %vm556_vm10, %v550_v41, %v564_v37  ;;  %vm237_vm10 = vcmp.le.s32.totalorder %v227_v13, 16  ;;  %v3720_v13 = vld [vmem:[#allocation3 + $0x208] sm:$0xff] }
  0xba   :  { %v574_v46 = vmul.f32 %v4049_v42, %v569_v45  ;;  %v531_v48 = vpop.f32.mrf.mxu2  ;;  %v366_v51 = vpop.f32.mrf.mxu0  ;;  %vm242_vm11 = vmand %vm232_vm9, %vm237_vm10 }
  0xbb   :  { %v542_v50 = vadd.f32 %v531_v48, %v436_v43  ;;  %v437_v52 = vpop.f32.mrf.mxu1  ;;  %v583_v8 = vld [vmem:[#allocation2] sm:$0xff]  ;;  %v4068_v31 = vsel %vm242_vm11, 1.0, %v3893_v0  ;;  %v3716_v0 = vld [vmem:[#allocation3 + $0x1e8] sm:$0xff] }
  0xbc   :  { %579 = vst [vmem:[#allocation2 + $0x9] sm:$0xff] %v574_v46  ;;  %v613_v53 = vpack.c.bf16 %v574_v46, %v573_v23  ;;  %v438_v62 = vadd.f32 %v437_v52, %v366_v51  ;;  %v3710_v23 = vld [vmem:[#allocation3 + $0x1b8] sm:$0xff]  ;;  %v3708_v43 = vld [vmem:[#allocation3 + $0x1a8] sm:$0xff]  ;;  %1001 = vmatpush.bf16.msrb.mxu2 %v3716_v0 }
  0xbd   :  { %v551_v57 = vadd.f32 %v4029_v3, %v542_v50  ;;  %1070 = vmatpush.bf16.msrb.mxu3 %v3710_v23 }
  0xbe   :  { %689 = vmatmul.bf16.vlgmr.msra.gmra.mxu3 %v613_v53  ;;  %v3725_v53 = vld [vmem:[#allocation3 + $0x230] sm:$0xff] }
  0xbf   :  { %vm557_vm1 = vcmp.ge.f32.partialorder %v551_v57, 0.0  ;;  %v565_v60 = vmul.f32 %v4034_v15, %v551_v57  ;;  %1167 = vmatpush.bf16.msra.mxu0 %v3725_v53 }
  0xc0   :  { %1002 = vmatpush.bf16.msrb.mxu2 %v3715_v54 }
  0xc1   :  { %v570_v61 = vsel %vm557_vm1, %v551_v57, %v565_v60  ;;  %1071 = vmatpush.bf16.msrb.mxu3 %v3709_v35  ;;  %v3707_v57 = vld [vmem:[#allocation3 + $0x1a0] sm:$0xff]  ;;  %v3714_v60 = vld [vmem:[#allocation3 + $0x1d8] sm:$0xff] }
  0xc2   :  { %v575_v63 = vmul.f32 %v4056_v59, %v570_v61  ;;  %v533_v1 = vpop.f32.mrf.mxu2  ;;  %v369_v4 = vpop.f32.mrf.mxu0  ;;  %v3713_v61 = vld [vmem:[#allocation3 + $0x1d0] sm:$0xff] }
  0xc3   :  { %v543_v2 = vadd.f32 %v533_v1, %v438_v62  ;;  %v440_v7 = vpop.f32.mrf.mxu1  ;;  %v584_v5 = vld [vmem:[#allocation2 + $0x8] sm:$0xff]  ;;  %1168 = vmatpush.bf16.msra.mxu0 %v3724_v58  ;;  %v3706_v62 = vld [vmem:[#allocation3 + $0x198] sm:$0xff]  ;;  %v3712_v1 = vld [vmem:[#allocation3 + $0x1c8] sm:$0xff] }
  0xc4   :  { %580 = vst [vmem:[#allocation2 + $0x11] sm:$0xff] %v575_v63  ;;  %v588_v9 = vpack.c.bf16 %v584_v5, %v583_v8  ;;  %v441_v16 = vadd.f32 %v440_v7, %v369_v4  ;;  %v775_v24 = vld [vmem:[#allocation2 + $0x2] sm:$0xff]  ;;  %1003 = vmatpush.bf16.msrb.mxu2 %v3714_v60  ;;  %v3704_v7 = vld [vmem:[#allocation3 + $0x188] sm:$0xff]  ;;  %v3721_v5 = vld [vmem:[#allocation3 + $0x210] sm:$0xff] }
  0xc5   :  { %v552_v10 = vadd.f32 %v4029_v3, %v543_v2  ;;  %1072 = vmatpush.bf16.msrb.mxu3 %v3708_v43  ;;  %v3711_v2 = vld [vmem:[#allocation3 + $0x1c0] sm:$0xff]  ;;  %v3722_v4 = vld [vmem:[#allocation3 + $0x218] sm:$0xff] }
  0xc6   :  { %760 = vmatmul.bf16.vlgmr.msrb.gmra.mxu0 %v588_v9  ;;  %v3703_v9 = vld [vmem:[#allocation3 + $0x180] sm:$0xff] }
  0xc7   :  { %vm558_vm8 = vcmp.ge.f32.partialorder %v552_v10, 0.0  ;;  %v566_v14 = vmul.f32 %v4034_v15, %v552_v10 }
  0xc8   :  { %1004 = vmatpush.bf16.msrb.mxu2 %v3713_v61 }
  0xc9   :  { %v571_v17 = vsel %vm558_vm8, %v552_v10, %v566_v14  ;;  %1073 = vmatpush.bf16.msrb.mxu3 %v3707_v57 }
  0xca   :  { %v576_v19 = vmul.f32 %v4062_v6, %v571_v17  ;;  %v536_v55 = vpop.f32.mrf.mxu2  ;;  %v371_v21 = vpop.f32.mrf.mxu0  ;;  %v3854_v17 = vld [vmem:[%s4228_s2 + $0x1] ss:$0 sm:$0xff] }
  0xcb   :  { %v544_v20 = vadd.f32 %v536_v55, %v441_v16  ;;  %v442_v22 = vpop.f32.mrf.mxu1  ;;  %v776_v26 = vld [vmem:[#allocation2 + $0xa] sm:$0xff] }
  0xcc   :  { %581 = vst [vmem:[#allocation2 + $0x19] sm:$0xff] %v576_v19  ;;  %v780_v27 = vpack.c.bf16 %v776_v26, %v775_v24  ;;  %v614_v28 = vpack.c.bf16 %v576_v19, %v575_v63  ;;  %v585_v41 = vld [vmem:[#allocation2 + $0x10] sm:$0xff]  ;;  %v3723_v63 = vld [vmem:[#allocation3 + $0x220] sm:$0xff]  ;;  %1005 = vmatpush.bf16.msrb.mxu2 %v3712_v1 }
  0xcd   :  { %v553_v29 = vadd.f32 %v4029_v3, %v544_v20  ;;  %1074 = vmatpush.bf16.msrb.mxu3 %v3706_v62  ;;  %1169 = vmatpush.bf16.msra.mxu0 %v3723_v63  ;;  %v3719_v19 = vld [vmem:[#allocation3 + $0x200] sm:$0xff] }
  0xce   :  { %856 = vmatmul.bf16.vlgmr.msrb.gmra.mxu1 %v780_v27  ;;  %694 = vmatmul.bf16.gmra.mxu3 %v614_v28 }
  0xcf   :  { %vm559_vm12 = vcmp.ge.f32.partialorder %v553_v29, 0.0  ;;  %v567_v32 = vmul.f32 %v4034_v15, %v553_v29 }
  0xd0   :  { %1006 = vmatpush.bf16.msrb.mxu2 %v3711_v2  ;;  %v3750_v2 = vld [vmem:[#allocation3 + $0x2f8] sm:$0xff] }
  0xd1   :  { %v572_v36 = vsel %vm559_vm12, %v553_v29, %v567_v32  ;;  %1075 = vmatpush.bf16.msrb.mxu3 %v3705_v18  ;;  %1170 = vmatpush.bf16.msra.mxu0 %v3722_v4  ;;  %v3734_v18 = vld [vmem:[#allocation3 + $0x278] sm:$0xff] }
  0xd2   :  { %v577_v38 = vmul.f32 %v4068_v31, %v572_v36  ;;  %v538_v3 = vpop.f32.mrf.mxu2  ;;  %v3742_v4 = vld [vmem:[#allocation3 + $0x2b8] sm:$0xff] }
  0xd3   :  { %v586_v56 = vld [vmem:[#allocation2 + $0x18] sm:$0xff]  ;;  %1332 = vmatpush.bf16.msra.mxu1 %v3742_v4 }
  0xd4   :  { %582 = vst [vmem:[#allocation2 + $0x21] sm:$0x3] %v577_v38  ;;  %v589_v37 = vpack.c.bf16 %v586_v56, %v585_v41  ;;  %v777_v15 = vld [vmem:[#allocation2 + $0x12] sm:$0xff]  ;;  %1403 = vmatpush.bf16.msra.mxu2 %v3734_v18 }
  0xd5   :  { %1076 = vmatpush.bf16.msrb.mxu3 %v3704_v7  ;;  %1171 = vmatpush.bf16.msra.mxu0 %v3721_v5  ;;  %v3733_v7 = vld [vmem:[#allocation3 + $0x270] sm:$0xff] }
  0xd6   :  { %765 = vmatmul.bf16.gmra.mxu0 %v589_v37 }
  0xd8   :  { %1404 = vmatpush.bf16.msra.mxu2 %v3733_v7 }
  0xd9   :  { %1077 = vmatpush.bf16.msrb.mxu3 %v3703_v9  ;;  %1172 = vmatpush.bf16.msra.mxu0 %v3720_v13 }
  0xdb   :  { %v778_v44 = vld [vmem:[#allocation2 + $0x1a] sm:$0xff]  ;;  %v779_v51 = vld [vmem:[#allocation2 + $0x22] sm:$0x3] }
  0xdc   :  { %v612_v45 = vld [vmem:[#allocation2 + $0x21] sm:$0x3]  ;;  %v781_v46 = vpack.c.bf16 %v778_v44, %v777_v15  ;;  %v782_v52 = vpack.c.bf16 %v779_v51, %v779_v51 }
  0xdd   :  { %v615_v48 = vpack.c.bf16 %v612_v45, %v612_v45  ;;  %v587_v47 = vld [vmem:[#allocation2 + $0x20] sm:$0x3]  ;;  %1173 = vmatpush.bf16.msra.mxu0 %v3719_v19  ;;  %1499 = vmatpush.bf16.msra.mxu3 %v3750_v2 }
  0xde   :  { %861 = vmatmul.bf16.gmra.mxu1 %v781_v46  ;;  %v590_v50 = vpack.c.bf16 %v587_v47, %v587_v47 }
  0xdf   :  { %699 = vmatmul.bf16.gmra.mxu3 %v615_v48 }
  0xe6   :  { %770 = vmatmul.bf16.gmra.mxu0 %v590_v50 }
  0xee   :  { %866 = vmatmul.bf16.gmra.mxu1 %v782_v52 }
 0x141   :  { %v690_v8 = vpop.f32.mrf.mxu3 }
 0x143   :  { %v761_v10 = vpop.f32.mrf.mxu0 }
 0x144   :  { %v762_v16 = vadd.f32 %v761_v10, %v690_v8  ;;  %v3749_v8 = vld [vmem:[#allocation3 + $0x2f0] sm:$0xff] }
 0x145   :  { %1500 = vmatpush.bf16.msra.mxu3 %v3749_v8 }
 0x149   :  { %v692_v14 = vpop.f32.mrf.mxu3 }
 0x14b   :  { %v763_v55 = vpop.f32.mrf.mxu0  ;;  %v857_v20 = vpop.f32.mrf.mxu1 }
 0x14c   :  { %v871_v21 = vadd.f32 %v857_v20, %v762_v16  ;;  %v764_v28 = vadd.f32 %v763_v55, %v692_v14 }
 0x14e   :  { %v881_v22 = vadd.f32 %v3854_v17, %v871_v21 }
 0x150   :  { %v886_v24 = vmul.f32 %v4042_v25, %v881_v22 }
 0x151   :  { %v695_v26 = vpop.f32.mrf.mxu3 }
 0x152   :  { %v4077_v27 = vadd.f32 %v886_v24, %v3931_v11 }
 0x153   :  { %v766_v29 = vpop.f32.mrf.mxu0  ;;  %v859_v30 = vpop.f32.mrf.mxu1 }
 0x154   :  { %896 = vst [vmem:[#allocation2 + $0x1] sm:$0xff] %v4077_v27  ;;  %v872_v23 = vadd.f32 %v859_v30, %v764_v28  ;;  %v767_v36 = vadd.f32 %v766_v29, %v695_v26  ;;  %v3741_v26 = vld [vmem:[#allocation3 + $0x2b0] sm:$0xff]  ;;  %v3740_v28 = vld [vmem:[#allocation3 + $0x2a8] sm:$0xff]  ;;  %v3739_v30 = vld [vmem:[#allocation3 + $0x2a0] sm:$0xff] }
 0x155   :  { %1333 = vmatpush.bf16.msra.mxu1 %v3741_v26  ;;  %v3732_v29 = vld [vmem:[#allocation3 + $0x268] sm:$0xff] }
 0x156   :  { %v882_v32 = vadd.f32 %v3854_v17, %v872_v23  ;;  %1405 = vmatpush.bf16.msra.mxu2 %v3732_v29  ;;  %v3738_v23 = vld [vmem:[#allocation3 + $0x298] sm:$0xff] }
 0x158   :  { %v887_v33 = vmul.f32 %v4049_v42, %v882_v32  ;;  %v3731_v32 = vld [vmem:[#allocation3 + $0x260] sm:$0xff] }
 0x159   :  { %v697_v34 = vpop.f32.mrf.mxu3  ;;  %1334 = vmatpush.bf16.msra.mxu1 %v3740_v28 }
 0x15a   :  { %v4082_v35 = vadd.f32 %v887_v33, %v3936_v12  ;;  %v3737_v33 = vld [vmem:[#allocation3 + $0x290] sm:$0xff]  ;;  %1406 = vmatpush.bf16.msra.mxu2 %v3731_v32 }
 0x15b   :  { %v768_v38 = vpop.f32.mrf.mxu0  ;;  %v862_v3 = vpop.f32.mrf.mxu1  ;;  %v901_v45 = vld [vmem:[#allocation2] sm:$0xff] }
 0x15c   :  { %897 = vst [vmem:[#allocation2 + $0x9] sm:$0xff] %v4082_v35  ;;  %v873_v11 = vadd.f32 %v862_v3, %v767_v36  ;;  %v931_v41 = vpack.c.bf16 %v4082_v35, %v4077_v27  ;;  %v769_v15 = vadd.f32 %v768_v38, %v697_v34  ;;  %v3748_v34 = vld [vmem:[#allocation3 + $0x2e8] sm:$0xff]  ;;  %v3747_v36 = vld [vmem:[#allocation3 + $0x2e0] sm:$0xff]  ;;  %v3730_v38 = vld [vmem:[#allocation3 + $0x258] sm:$0xff] }
 0x15d   :  { %1335 = vmatpush.bf16.msra.mxu1 %v3739_v30  ;;  %1501 = vmatpush.bf16.msra.mxu3 %v3748_v34  ;;  %v3736_v3 = vld [vmem:[#allocation3 + $0x288] sm:$0xff] }
 0x15e   :  { %v883_v56 = vadd.f32 %v3854_v17, %v873_v11  ;;  %1007 = vmatmul.bf16.vlgmr.msrb.gmra.mxu2 %v931_v41  ;;  %v3729_v11 = vld [vmem:[#allocation3 + $0x250] sm:$0xff]  ;;  %v3735_v41 = vld [vmem:[#allocation3 + $0x280] sm:$0xff] }
 0x15f   :  { %1407 = vmatpush.bf16.msra.mxu2 %v3730_v38 }
 0x160   :  { %v888_v37 = vmul.f32 %v4056_v59, %v883_v56  ;;  %v3746_v56 = vld [vmem:[#allocation3 + $0x2d8] sm:$0xff] }
 0x161   :  { %1336 = vmatpush.bf16.msra.mxu1 %v3738_v23  ;;  %1502 = vmatpush.bf16.msra.mxu3 %v3747_v36 }
 0x162   :  { %v700_v0 = vpop.f32.mrf.mxu3  ;;  %v4089_v43 = vadd.f32 %v888_v37, %v3948_v39  ;;  %v3728_v37 = vld [vmem:[#allocation3 + $0x248] sm:$0xff] }
 0x163   :  { %v771_v12 = vpop.f32.mrf.mxu0  ;;  %v864_v44 = vpop.f32.mrf.mxu1  ;;  %v902_v46 = vld [vmem:[#allocation2 + $0x8] sm:$0xff]  ;;  %1408 = vmatpush.bf16.msra.mxu2 %v3729_v11 }
 0x164   :  { %898 = vst [vmem:[#allocation2 + $0x11] sm:$0xff] %v4089_v43  ;;  %v874_v48 = vadd.f32 %v864_v44, %v769_v15  ;;  %v906_v47 = vpack.c.bf16 %v902_v46, %v901_v45  ;;  %v772_v54 = vadd.f32 %v771_v12, %v700_v0  ;;  %v1093_v58 = vld [vmem:[#allocation2 + $0x2] sm:$0xff]  ;;  %v3745_v15 = vld [vmem:[#allocation3 + $0x2d0] sm:$0xff]  ;;  %v3744_v44 = vld [vmem:[#allocation3 + $0x2c8] sm:$0xff] }
 0x165   :  { %1337 = vmatpush.bf16.msra.mxu1 %v3737_v33  ;;  %1503 = vmatpush.bf16.msra.mxu3 %v3746_v56  ;;  %v3727_v12 = vld [vmem:[#allocation3 + $0x240] sm:$0xff] }
 0x166   :  { %v884_v50 = vadd.f32 %v3854_v17, %v874_v48  ;;  %1078 = vmatmul.bf16.vlgmr.msrb.gmra.mxu3 %v906_v47  ;;  %v3855_v47 = vld [vmem:[%s4228_s2 + $0x2] ss:$0 sm:$0xff] }
 0x167   :  { %1409 = vmatpush.bf16.msra.mxu2 %v3728_v37 }
 0x168   :  { %v889_v51 = vmul.f32 %v4062_v6, %v884_v50 }
 0x169   :  { %1338 = vmatpush.bf16.msra.mxu1 %v3736_v3  ;;  %1504 = vmatpush.bf16.msra.mxu3 %v3745_v15 }
 0x16a   :  { %v702_v52 = vpop.f32.mrf.mxu3  ;;  %v4094_v53 = vadd.f32 %v889_v51, %v3950_v40  ;;  %v3743_v51 = vld [vmem:[#allocation3 + $0x2c0] sm:$0xff] }
 0x16b   :  { %v773_v39 = vpop.f32.mrf.mxu0  ;;  %v867_v57 = vpop.f32.mrf.mxu1  ;;  %v1094_v60 = vld [vmem:[#allocation2 + $0xa] sm:$0xff]  ;;  %1410 = vmatpush.bf16.msra.mxu2 %v3727_v12 }
 0x16c   :  { %899 = vst [vmem:[#allocation2 + $0x19] sm:$0xff] %v4094_v53  ;;  %v875_v61 = vadd.f32 %v867_v57, %v772_v54  ;;  %v1098_v62 = vpack.c.bf16 %v1094_v60, %v1093_v58  ;;  %v932_v63 = vpack.c.bf16 %v4094_v53, %v4089_v43  ;;  %v903_v10 = vld [vmem:[#allocation2 + $0x10] sm:$0xff]  ;;  %v3856_v54 = vld [vmem:[%s4229_s3 + $0x1] ss:$0 sm:$0xff] }
 0x16d   :  { %1339 = vmatpush.bf16.msra.mxu1 %v3735_v41  ;;  %1505 = vmatpush.bf16.msra.mxu3 %v3744_v44 }
 0x16e   :  { %v885_v1 = vadd.f32 %v3854_v17, %v875_v61  ;;  %1174 = vmatmul.bf16.vlgmr.msra.gmra.mxu0 %v1098_v62  ;;  %1012 = vmatmul.bf16.gmra.mxu2 %v932_v63 }
 0x170   :  { %v890_v40 = vmul.f32 %v4068_v31, %v885_v1 }
 0x171   :  { %1506 = vmatpush.bf16.msra.mxu3 %v3743_v51 }
 0x172   :  { %v4101_v5 = vadd.f32 %v890_v40, %v3954_v49 }
 0x173   :  { %v869_v9 = vpop.f32.mrf.mxu1  ;;  %v904_v13 = vld [vmem:[#allocation2 + $0x18] sm:$0xff] }
 0x174   :  { %900 = vst [vmem:[#allocation2 + $0x21] sm:$0x3] %v4101_v5  ;;  %v907_v14 = vpack.c.bf16 %v904_v13, %v903_v10  ;;  %v1095_v16 = vld [vmem:[#allocation2 + $0x12] sm:$0xff] }
 0x176   :  { %1083 = vmatmul.bf16.gmra.mxu3 %v907_v14 }
 0x17b   :  { %v1096_v17 = vld [vmem:[#allocation2 + $0x1a] sm:$0xff]  ;;  %v1097_v49 = vld [vmem:[#allocation2 + $0x22] sm:$0x3] }
 0x17c   :  { %v930_v19 = vld [vmem:[#allocation2 + $0x21] sm:$0x3]  ;;  %v1099_v55 = vpack.c.bf16 %v1096_v17, %v1095_v16  ;;  %v1100_v24 = vpack.c.bf16 %v1097_v49, %v1097_v49 }
 0x17d   :  { %v933_v20 = vpack.c.bf16 %v930_v19, %v930_v19  ;;  %v905_v21 = vld [vmem:[#allocation2 + $0x20] sm:$0x3] }
 0x17e   :  { %1179 = vmatmul.bf16.gmra.mxu0 %v1099_v55  ;;  %v908_v22 = vpack.c.bf16 %v905_v21, %v905_v21 }
 0x17f   :  { %1017 = vmatmul.bf16.gmra.mxu2 %v933_v20 }
 0x186   :  { %1088 = vmatmul.bf16.gmra.mxu3 %v908_v22 }
 0x18e   :  { %1184 = vmatmul.bf16.gmra.mxu0 %v1100_v24 }
 0x1e1   :  { %v1008_v0 = vpop.f32.mrf.mxu2 }
 0x1e9   :  { %v1079_v45 = vpop.f32.mrf.mxu3  ;;  %v1010_v46 = vpop.f32.mrf.mxu2 }
 0x1ea   :  { %v1080_v48 = vadd.f32 %v1079_v45, %v1008_v0 }
 0x1eb   :  { %v1175_v50 = vpop.f32.mrf.mxu0 }
 0x1ec   :  { %v1189_v52 = vadd.f32 %v1175_v50, %v1080_v48 }
 0x1ee   :  { %v1199_v39 = vadd.f32 %v3855_v47, %v1189_v52 }
 0x1f0   :  { %vm1206_vm13 = vcmp.ge.f32.partialorder %v1199_v39, 0.0  ;;  %v1214_v57 = vmul.f32 %v3856_v54, %v1199_v39 }
 0x1f1   :  { %v1081_v58 = vpop.f32.mrf.mxu3  ;;  %v1013_v60 = vpop.f32.mrf.mxu2 }
 0x1f2   :  { %v1219_v61 = vsel %vm1206_vm13, %v1199_v39, %v1214_v57  ;;  %v1082_v62 = vadd.f32 %v1081_v58, %v1010_v46 }
 0x1f3   :  { %v1224_v63 = vmul.f32 %v4042_v25, %v1219_v61  ;;  %v1177_v1 = vpop.f32.mrf.mxu0 }
 0x1f4   :  { %v1190_v18 = vadd.f32 %v1177_v1, %v1082_v62 }
 0x1f5   :  { %1229 = vst [vmem:[#allocation2 + $0x1] sm:$0xff] %v1224_v63 }
 0x1f6   :  { %v1200_v2 = vadd.f32 %v3855_v47, %v1190_v18  ;;  %v3774_v18 = vld [vmem:[#allocation3 + $0x3b8] sm:$0xff] }
 0x1f7   :  { %1817 = vmatpush.bf16.msrb.mxu2 %v3774_v18 }
 0x1f8   :  { %vm1207_vm14 = vcmp.ge.f32.partialorder %v1200_v2, 0.0  ;;  %v1215_v4 = vmul.f32 %v3856_v54, %v1200_v2 }
 0x1f9   :  { %v1084_v40 = vpop.f32.mrf.mxu3  ;;  %v1015_v7 = vpop.f32.mrf.mxu2 }
 0x1fa   :  { %v1220_v8 = vsel %vm1207_vm14, %v1200_v2, %v1215_v4  ;;  %v1085_v9 = vadd.f32 %v1084_v40, %v1013_v60  ;;  %v3766_v2 = vld [vmem:[#allocation3 + $0x378] sm:$0xff]  ;;  %v3765_v40 = vld [vmem:[#allocation3 + $0x370] sm:$0xff] }
 0x1fb   :  { %v1225_v10 = vmul.f32 %v4049_v42, %v1220_v8  ;;  %v1180_v13 = vpop.f32.mrf.mxu0  ;;  %v3758_v4 = vld [vmem:[#allocation3 + $0x338] sm:$0xff]  ;;  %1650 = vmatpush.bf16.msrb.mxu0 %v3766_v2  ;;  %v3757_v8 = vld [vmem:[#allocation3 + $0x330] sm:$0xff] }
 0x1fc   :  { %v1191_v14 = vadd.f32 %v1180_v13, %v1085_v9  ;;  %v1234_v28 = vld [vmem:[#allocation2] sm:$0xff]  ;;  %1721 = vmatpush.bf16.msrb.mxu1 %v3758_v4  ;;  %v3772_v9 = vld [vmem:[#allocation3 + $0x3a8] sm:$0xff]  ;;  %v3763_v13 = vld [vmem:[#allocation3 + $0x360] sm:$0xff] }
 0x1fd   :  { %1230 = vst [vmem:[#allocation2 + $0x9] sm:$0xff] %v1225_v10  ;;  %v1264_v16 = vpack.c.bf16 %v1225_v10, %v1224_v63  ;;  %v3764_v10 = vld [vmem:[#allocation3 + $0x368] sm:$0xff] }
 0x1fe   :  { %v1201_v17 = vadd.f32 %v3855_v47, %v1191_v14  ;;  %v3756_v14 = vld [vmem:[#allocation3 + $0x328] sm:$0xff] }
 0x1ff   :  { %1340 = vmatmul.bf16.vlgmr.msra.gmra.mxu1 %v1264_v16  ;;  %1651 = vmatpush.bf16.msrb.mxu0 %v3765_v40  ;;  %v3762_v16 = vld [vmem:[#allocation3 + $0x358] sm:$0xff] }
 0x200   :  { %vm1208_vm15 = vcmp.ge.f32.partialorder %v1201_v17, 0.0  ;;  %v1216_v19 = vmul.f32 %v3856_v54, %v1201_v17  ;;  %1722 = vmatpush.bf16.msrb.mxu1 %v3757_v8 }
 0x201   :  { %v1086_v55 = vpop.f32.mrf.mxu3 }
 0x202   :  { %v1018_v20 = vpop.f32.mrf.mxu2  ;;  %v1221_v21 = vsel %vm1208_vm15, %v1201_v17, %v1216_v19  ;;  %v1087_v22 = vadd.f32 %v1086_v55, %v1015_v7  ;;  %v3773_v7 = vld [vmem:[#allocation3 + $0x3b0] sm:$0xff]  ;;  %v3755_v17 = vld [vmem:[#allocation3 + $0x320] sm:$0xff] }
 0x203   :  { %v1226_v49 = vmul.f32 %v4056_v59, %v1221_v21  ;;  %v1182_v24 = vpop.f32.mrf.mxu0  ;;  %1818 = vmatpush.bf16.msrb.mxu2 %v3773_v7  ;;  %1652 = vmatpush.bf16.msrb.mxu0 %v3764_v10  ;;  %v3761_v19 = vld [vmem:[#allocation3 + $0x350] sm:$0xff]  ;;  %v3771_v55 = vld [vmem:[#allocation3 + $0x3a0] sm:$0xff]  ;;  %v3754_v21 = vld [vmem:[#allocation3 + $0x318] sm:$0xff] }
 0x204   :  { %v1192_v26 = vadd.f32 %v1182_v24, %v1087_v22  ;;  %v1235_v29 = vld [vmem:[#allocation2 + $0x8] sm:$0xff]  ;;  %1723 = vmatpush.bf16.msrb.mxu1 %v3756_v14  ;;  %v3760_v22 = vld [vmem:[#allocation3 + $0x348] sm:$0xff] }
 0x205   :  { %1231 = vst [vmem:[#allocation2 + $0x11] sm:$0xff] %v1226_v49  ;;  %v1239_v30 = vpack.c.bf16 %v1235_v29, %v1234_v28  ;;  %v1426_v56 = vld [vmem:[#allocation2 + $0x2] sm:$0xff]  ;;  %v3752_v29 = vld [vmem:[#allocation3 + $0x308] sm:$0xff] }
 0x206   :  { %v1202_v23 = vadd.f32 %v3855_v47, %v1192_v26  ;;  %v3759_v24 = vld [vmem:[#allocation3 + $0x340] sm:$0xff]  ;;  %v3770_v26 = vld [vmem:[#allocation3 + $0x398] sm:$0xff] }
 0x207   :  { %1411 = vmatmul.bf16.vlgmr.msra.gmra.mxu2 %v1239_v30  ;;  %1653 = vmatpush.bf16.msrb.mxu0 %v3763_v13  ;;  %v3769_v30 = vld [vmem:[#allocation3 + $0x390] sm:$0xff] }
 0x208   :  { %vm1209_vm0 = vcmp.ge.f32.partialorder %v1202_v23, 0.0  ;;  %v1217_v32 = vmul.f32 %v3856_v54, %v1202_v23  ;;  %1819 = vmatpush.bf16.msrb.mxu2 %v3772_v9  ;;  %1724 = vmatpush.bf16.msrb.mxu1 %v3755_v17 }
 0x209   :  { %v1089_v33 = vpop.f32.mrf.mxu3 }
 0x20a   :  { %v1020_v34 = vpop.f32.mrf.mxu2  ;;  %v1222_v36 = vsel %vm1209_vm0, %v1202_v23, %v1217_v32  ;;  %v1090_v38 = vadd.f32 %v1089_v33, %v1018_v20  ;;  %v3751_v23 = vld [vmem:[#allocation3 + $0x300] sm:$0xff]  ;;  %v3768_v33 = vld [vmem:[#allocation3 + $0x388] sm:$0xff] }
 0x20b   :  { %v1227_v3 = vmul.f32 %v4062_v6, %v1222_v36  ;;  %v1185_v11 = vpop.f32.mrf.mxu0  ;;  %1654 = vmatpush.bf16.msrb.mxu0 %v3762_v16 }
 0x20c   :  { %v1193_v41 = vadd.f32 %v1185_v11, %v1090_v38  ;;  %v1427_v37 = vld [vmem:[#allocation2 + $0xa] sm:$0xff]  ;;  %1820 = vmatpush.bf16.msrb.mxu2 %v3771_v55  ;;  %1725 = vmatpush.bf16.msrb.mxu1 %v3754_v21  ;;  %v3857_v38 = vld [vmem:[%s4228_s2 + $0x3] ss:$0 sm:$0xff] }
 0x20d   :  { %1232 = vst [vmem:[#allocation2 + $0x19] sm:$0xff] %v1227_v3  ;;  %v1431_v0 = vpack.c.bf16 %v1427_v37, %v1426_v56  ;;  %v1265_v15 = vpack.c.bf16 %v1227_v3, %v1226_v49  ;;  %v1236_v51 = vld [vmem:[#allocation2 + $0x10] sm:$0xff]  ;;  %v3753_v49 = vld [vmem:[#allocation3 + $0x310] sm:$0xff]  ;;  %v3767_v3 = vld [vmem:[#allocation3 + $0x380] sm:$0xff] }
 0x20e   :  { %v1203_v12 = vadd.f32 %v3855_v47, %v1193_v41 }
 0x20f   :  { %1507 = vmatmul.bf16.vlgmr.msra.gmra.mxu3 %v1431_v0  ;;  %1345 = vmatmul.bf16.gmra.mxu1 %v1265_v15 }
 0x210   :  { %vm1210_vm1 = vcmp.ge.f32.partialorder %v1203_v12, 0.0  ;;  %v1218_v44 = vmul.f32 %v3856_v54, %v1203_v12  ;;  %1655 = vmatpush.bf16.msrb.mxu0 %v3761_v19  ;;  %1726 = vmatpush.bf16.msrb.mxu1 %v3753_v49 }
 0x211   :  { %v1091_v45 = vpop.f32.mrf.mxu3  ;;  %1821 = vmatpush.bf16.msrb.mxu2 %v3770_v26 }
 0x212   :  { %v1223_v46 = vsel %vm1210_vm1, %v1203_v12, %v1218_v44 }
 0x213   :  { %v1228_v48 = vmul.f32 %v4068_v31, %v1223_v46  ;;  %v1187_v50 = vpop.f32.mrf.mxu0 }
 0x214   :  { %v1237_v52 = vld [vmem:[#allocation2 + $0x18] sm:$0xff]  ;;  %1656 = vmatpush.bf16.msrb.mxu0 %v3760_v22  ;;  %1727 = vmatpush.bf16.msrb.mxu1 %v3752_v29  ;;  %v3790_v22 = vld [vmem:[#allocation3 + $0x438] sm:$0xff] }
 0x215   :  { %1233 = vst [vmem:[#allocation2 + $0x21] sm:$0x3] %v1228_v48  ;;  %v1240_v39 = vpack.c.bf16 %v1237_v52, %v1236_v51  ;;  %v1428_v57 = vld [vmem:[#allocation2 + $0x12] sm:$0xff]  ;;  %1822 = vmatpush.bf16.msrb.mxu2 %v3769_v30  ;;  %1983 = vmatpush.bf16.msrb.mxu3 %v3790_v22 }
 0x217   :  { %1416 = vmatmul.bf16.gmra.mxu2 %v1240_v39 }
 0x218   :  { %1657 = vmatpush.bf16.msrb.mxu0 %v3759_v24  ;;  %1728 = vmatpush.bf16.msrb.mxu1 %v3751_v23 }
 0x219   :  { %1823 = vmatpush.bf16.msrb.mxu2 %v3768_v33 }
 0x21c   :  { %v1429_v58 = vld [vmem:[#allocation2 + $0x1a] sm:$0xff]  ;;  %v1430_v54 = vld [vmem:[#allocation2 + $0x22] sm:$0x3] }
 0x21d   :  { %v1263_v60 = vld [vmem:[#allocation2 + $0x21] sm:$0x3]  ;;  %v1432_v61 = vpack.c.bf16 %v1429_v58, %v1428_v57  ;;  %v1433_v1 = vpack.c.bf16 %v1430_v54, %v1430_v54  ;;  %1824 = vmatpush.bf16.msrb.mxu2 %v3767_v3 }
 0x21e   :  { %v1266_v62 = vpack.c.bf16 %v1263_v60, %v1263_v60  ;;  %v1238_v47 = vld [vmem:[#allocation2 + $0x20] sm:$0x3] }
 0x21f   :  { %1512 = vmatmul.bf16.gmra.mxu3 %v1432_v61  ;;  %v1241_v63 = vpack.c.bf16 %v1238_v47, %v1238_v47 }
 0x220   :  { %1350 = vmatmul.bf16.gmra.mxu1 %v1266_v62 }
 0x227   :  { %1421 = vmatmul.bf16.gmra.mxu2 %v1241_v63 }
 0x22f   :  { %1517 = vmatmul.bf16.gmra.mxu3 %v1433_v1 }
 0x27c   :  { %v1341_v20 = vpop.f32.mrf.mxu1 }
 0x284   :  { %v1343_v28 = vpop.f32.mrf.mxu1 }
 0x28a   :  { %v1412_v32 = vpop.f32.mrf.mxu2 }
 0x28b   :  { %v1413_v36 = vadd.f32 %v1412_v32, %v1341_v20 }
 0x28c   :  { %v1346_v34 = vpop.f32.mrf.mxu1 }
 0x292   :  { %v1414_v11 = vpop.f32.mrf.mxu2  ;;  %v1508_v41 = vpop.f32.mrf.mxu3 }
 0x293   :  { %v1522_v56 = vadd.f32 %v1508_v41, %v1413_v36  ;;  %v1415_v12 = vadd.f32 %v1414_v11, %v1343_v28  ;;  %v3789_v11 = vld [vmem:[#allocation3 + $0x430] sm:$0xff]  ;;  %v3782_v41 = vld [vmem:[#allocation3 + $0x3f8] sm:$0xff] }
 0x294   :  { %v1348_v37 = vpop.f32.mrf.mxu1  ;;  %1984 = vmatpush.bf16.msrb.mxu3 %v3789_v11  ;;  %2054 = vmatpush.bf16.msra.mxu0 %v3782_v41 }
 0x295   :  { %v1532_v0 = vadd.f32 %v3857_v38, %v1522_v56  ;;  %v3798_v56 = vld [vmem:[#allocation3 + $0x478] sm:$0xff] }
 0x296   :  { %2150 = vmatpush.bf16.msra.mxu1 %v3798_v56 }
 0x297   :  { %v1537_v15 = vmul.f32 %v4042_v25, %v1532_v0  ;;  %v3781_v0 = vld [vmem:[#allocation3 + $0x3f0] sm:$0xff] }
 0x298   :  { %2055 = vmatpush.bf16.msra.mxu0 %v3781_v0 }
 0x299   :  { %v4120_v44 = vadd.f32 %v1537_v15, %v4077_v27  ;;  %v3797_v15 = vld [vmem:[#allocation3 + $0x470] sm:$0xff] }
 0x29a   :  { %v1417_v45 = vpop.f32.mrf.mxu2  ;;  %v1510_v46 = vpop.f32.mrf.mxu3  ;;  %2151 = vmatpush.bf16.msra.mxu1 %v3797_v15 }
 0x29b   :  { %1547 = vst [vmem:[#allocation2 + $0x1] sm:$0xff] %v4120_v44  ;;  %v1523_v48 = vadd.f32 %v1510_v46, %v1415_v12  ;;  %v1418_v39 = vadd.f32 %v1417_v45, %v1346_v34  ;;  %v3787_v12 = vld [vmem:[#allocation3 + $0x420] sm:$0xff]  ;;  %v3780_v45 = vld [vmem:[#allocation3 + $0x3e8] sm:$0xff]  ;;  %v3786_v46 = vld [vmem:[#allocation3 + $0x418] sm:$0xff] }
 0x29c   :  { %2056 = vmatpush.bf16.msra.mxu0 %v3780_v45 }
 0x29d   :  { %v1351_v50 = vpop.f32.mrf.mxu1  ;;  %v1533_v51 = vadd.f32 %v3857_v38, %v1523_v48  ;;  %v3779_v48 = vld [vmem:[#allocation3 + $0x3e0] sm:$0xff] }
 0x29f   :  { %v1538_v52 = vmul.f32 %v4049_v42, %v1533_v51 }
 0x2a0   :  { %2057 = vmatpush.bf16.msra.mxu0 %v3779_v48 }
 0x2a1   :  { %v4125_v57 = vadd.f32 %v1538_v52, %v4082_v35  ;;  %v3796_v52 = vld [vmem:[#allocation3 + $0x468] sm:$0xff] }
 0x2a2   :  { %v1419_v58 = vpop.f32.mrf.mxu2  ;;  %v1513_v60 = vpop.f32.mrf.mxu3  ;;  %v1552_v2 = vld [vmem:[#allocation2] sm:$0xff]  ;;  %2152 = vmatpush.bf16.msra.mxu1 %v3796_v52 }
 0x2a3   :  { %1548 = vst [vmem:[#allocation2 + $0x9] sm:$0xff] %v4125_v57  ;;  %v1524_v61 = vadd.f32 %v1513_v60, %v1418_v39  ;;  %v1582_v27 = vpack.c.bf16 %v4125_v57, %v4120_v44  ;;  %v1420_v54 = vadd.f32 %v1419_v58, %v1348_v37  ;;  %v3788_v37 = vld [vmem:[#allocation3 + $0x428] sm:$0xff]  ;;  %v3795_v39 = vld [vmem:[#allocation3 + $0x460] sm:$0xff]  ;;  %v3778_v58 = vld [vmem:[#allocation3 + $0x3d8] sm:$0xff] }
 0x2a4   :  { %1985 = vmatpush.bf16.msrb.mxu3 %v3788_v37  ;;  %v3784_v60 = vld [vmem:[#allocation3 + $0x408] sm:$0xff]  ;;  %2058 = vmatpush.bf16.msra.mxu0 %v3778_v58 }
 0x2a5   :  { %v1353_v62 = vpop.f32.mrf.mxu1  ;;  %v1534_v47 = vadd.f32 %v3857_v38, %v1524_v61  ;;  %1658 = vmatmul.bf16.vlgmr.msrb.gmra.mxu0 %v1582_v27  ;;  %v3777_v61 = vld [vmem:[#allocation3 + $0x3d0] sm:$0xff]  ;;  %v3783_v27 = vld [vmem:[#allocation3 + $0x400] sm:$0xff] }
 0x2a6   :  { %2153 = vmatpush.bf16.msra.mxu1 %v3795_v39 }
 0x2a7   :  { %v1539_v63 = vmul.f32 %v4056_v59, %v1534_v47 }
 0x2a8   :  { %1986 = vmatpush.bf16.msrb.mxu3 %v3787_v12  ;;  %2059 = vmatpush.bf16.msra.mxu0 %v3777_v61 }
 0x2a9   :  { %v4132_v1 = vadd.f32 %v1539_v63, %v4089_v43  ;;  %v3794_v63 = vld [vmem:[#allocation3 + $0x458] sm:$0xff] }
 0x2aa   :  { %v1422_v18 = vpop.f32.mrf.mxu2  ;;  %v1515_v35 = vpop.f32.mrf.mxu3  ;;  %v1553_v4 = vld [vmem:[#allocation2 + $0x8] sm:$0xff]  ;;  %2154 = vmatpush.bf16.msra.mxu1 %v3794_v63 }
 0x2ab   :  { %1549 = vst [vmem:[#allocation2 + $0x11] sm:$0xff] %v4132_v1  ;;  %v1525_v40 = vadd.f32 %v1515_v35, %v1420_v54  ;;  %v1557_v7 = vpack.c.bf16 %v1553_v4, %v1552_v2  ;;  %v1423_v10 = vadd.f32 %v1422_v18, %v1351_v50  ;;  %v1744_v43 = vld [vmem:[#allocation2 + $0x2] sm:$0xff]  ;;  %v3785_v50 = vld [vmem:[#allocation3 + $0x410] sm:$0xff]  ;;  %v3776_v54 = vld [vmem:[#allocation3 + $0x3c8] sm:$0xff] }
 0x2ac   :  { %1987 = vmatpush.bf16.msrb.mxu3 %v3786_v46  ;;  %2060 = vmatpush.bf16.msra.mxu0 %v3776_v54  ;;  %v3793_v18 = vld [vmem:[#allocation3 + $0x450] sm:$0xff]  ;;  %v3775_v35 = vld [vmem:[#allocation3 + $0x3c0] sm:$0xff] }
 0x2ad   :  { %v1535_v8 = vadd.f32 %v3857_v38, %v1525_v40  ;;  %1729 = vmatmul.bf16.vlgmr.msrb.gmra.mxu1 %v1557_v7  ;;  %v3792_v40 = vld [vmem:[#allocation3 + $0x448] sm:$0xff] }
 0x2ae   :  { %2155 = vmatpush.bf16.msra.mxu1 %v3793_v18 }
 0x2af   :  { %v1540_v9 = vmul.f32 %v4062_v6, %v1535_v8  ;;  %v3858_v8 = vld [vmem:[%s4228_s2 + $0x4] ss:$0 sm:$0xff] }
 0x2b0   :  { %1988 = vmatpush.bf16.msrb.mxu3 %v3785_v50  ;;  %2061 = vmatpush.bf16.msra.mxu0 %v3775_v35  ;;  %v3814_v35 = vld [vmem:[#allocation3 + $0x4f8] sm:$0xff] }
 0x2b1   :  { %v4137_v13 = vadd.f32 %v1540_v9, %v4094_v53  ;;  %2301 = vmatpush.bf16.msra.mxu2 %v3814_v35 }
 0x2b2   :  { %v1424_v14 = vpop.f32.mrf.mxu2  ;;  %v1518_v16 = vpop.f32.mrf.mxu3  ;;  %v1745_v17 = vld [vmem:[#allocation2 + $0xa] sm:$0xff]  ;;  %2156 = vmatpush.bf16.msra.mxu1 %v3792_v40  ;;  %v3822_v40 = vld [vmem:[#allocation3 + $0x538] sm:$0xff] }
 0x2b3   :  { %1550 = vst [vmem:[#allocation2 + $0x19] sm:$0xff] %v4137_v13  ;;  %v1526_v19 = vadd.f32 %v1518_v16, %v1423_v10  ;;  %v1749_v55 = vpack.c.bf16 %v1745_v17, %v1744_v43  ;;  %v1583_v20 = vpack.c.bf16 %v4137_v13, %v4132_v1  ;;  %v1554_v26 = vld [vmem:[#allocation2 + $0x10] sm:$0xff]  ;;  %v3791_v10 = vld [vmem:[#allocation3 + $0x440] sm:$0xff]  ;;  %v3859_v16 = vld [vmem:[%s4229_s3 + $0x2] ss:$0 sm:$0xff] }
 0x2b4   :  { %1989 = vmatpush.bf16.msrb.mxu3 %v3784_v60  ;;  %2468 = vmatpush.bf16.msrb.mxu0 %v3822_v40 }
 0x2b5   :  { %v1536_v21 = vadd.f32 %v3857_v38, %v1526_v19  ;;  %1825 = vmatmul.bf16.vlgmr.msrb.gmra.mxu2 %v1749_v55  ;;  %1663 = vmatmul.bf16.gmra.mxu0 %v1583_v20 }
 0x2b6   :  { %2157 = vmatpush.bf16.msra.mxu1 %v3791_v10 }
 0x2b7   :  { %v1541_v49 = vmul.f32 %v4068_v31, %v1536_v21 }
 0x2b8   :  { %1990 = vmatpush.bf16.msrb.mxu3 %v3783_v27 }
 0x2b9   :  { %v4144_v53 = vadd.f32 %v1541_v49, %v4101_v5 }
 0x2ba   :  { %v1520_v24 = vpop.f32.mrf.mxu3  ;;  %v1555_v28 = vld [vmem:[#allocation2 + $0x18] sm:$0xff] }
 0x2bb   :  { %1551 = vst [vmem:[#allocation2 + $0x21] sm:$0x3] %v4144_v53  ;;  %v1558_v29 = vpack.c.bf16 %v1555_v28, %v1554_v26  ;;  %v1746_v30 = vld [vmem:[#allocation2 + $0x12] sm:$0xff] }
 0x2bd   :  { %1734 = vmatmul.bf16.gmra.mxu1 %v1558_v29 }
 0x2c2   :  { %v1747_v23 = vld [vmem:[#allocation2 + $0x1a] sm:$0xff]  ;;  %v1748_v3 = vld [vmem:[#allocation2 + $0x22] sm:$0x3] }
 0x2c3   :  { %v1581_v32 = vld [vmem:[#allocation2 + $0x21] sm:$0x3]  ;;  %v1750_v33 = vpack.c.bf16 %v1747_v23, %v1746_v30  ;;  %v1751_v5 = vpack.c.bf16 %v1748_v3, %v1748_v3 }
 0x2c4   :  { %v1584_v34 = vpack.c.bf16 %v1581_v32, %v1581_v32  ;;  %v1556_v36 = vld [vmem:[#allocation2 + $0x20] sm:$0x3] }
 0x2c5   :  { %1830 = vmatmul.bf16.gmra.mxu2 %v1750_v33  ;;  %v1559_v38 = vpack.c.bf16 %v1556_v36, %v1556_v36 }
 0x2c6   :  { %1668 = vmatmul.bf16.gmra.mxu0 %v1584_v34 }
 0x2cd   :  { %1739 = vmatmul.bf16.gmra.mxu1 %v1559_v38 }
 0x2d5   :  { %1835 = vmatmul.bf16.gmra.mxu2 %v1751_v5 }
 0x322   :  { %v1659_v51 = vpop.f32.mrf.mxu0 }
 0x32a   :  { %v1730_v62 = vpop.f32.mrf.mxu1  ;;  %v1661_v47 = vpop.f32.mrf.mxu0 }
 0x32b   :  { %v1731_v7 = vadd.f32 %v1730_v62, %v1659_v51 }
 0x332   :  { %v1732_v2 = vpop.f32.mrf.mxu1  ;;  %v1664_v4 = vpop.f32.mrf.mxu0 }
 0x333   :  { %v1733_v20 = vadd.f32 %v1732_v2, %v1661_v47  ;;  %v3806_v2 = vld [vmem:[#allocation3 + $0x4b8] sm:$0xff] }
 0x334   :  { %2372 = vmatpush.bf16.msra.mxu3 %v3806_v2 }
 0x338   :  { %v1826_v9 = vpop.f32.mrf.mxu2 }
 0x339   :  { %v1840_v14 = vadd.f32 %v1826_v9, %v1731_v7  ;;  %v3813_v7 = vld [vmem:[#allocation3 + $0x4f0] sm:$0xff] }
 0x33a   :  { %v1735_v43 = vpop.f32.mrf.mxu1  ;;  %v1666_v17 = vpop.f32.mrf.mxu0  ;;  %v3805_v9 = vld [vmem:[#allocation3 + $0x4b0] sm:$0xff]  ;;  %2302 = vmatpush.bf16.msra.mxu2 %v3813_v7 }
 0x33b   :  { %v1850_v19 = vadd.f32 %v3858_v8, %v1840_v14  ;;  %v1736_v23 = vadd.f32 %v1735_v43, %v1664_v4  ;;  %2373 = vmatpush.bf16.msra.mxu3 %v3805_v9 }
 0x33d   :  { %vm1857_vm2 = vcmp.ge.f32.partialorder %v1850_v19, 0.0  ;;  %v1865_v55 = vmul.f32 %v3859_v16, %v1850_v19 }
 0x33f   :  { %v1870_v21 = vsel %vm1857_vm2, %v1850_v19, %v1865_v55  ;;  %v3812_v55 = vld [vmem:[#allocation3 + $0x4e8] sm:$0xff] }
 0x340   :  { %v1875_v22 = vmul.f32 %v4042_v25, %v1870_v21  ;;  %v1828_v49 = vpop.f32.mrf.mxu2  ;;  %2303 = vmatpush.bf16.msra.mxu2 %v3812_v55 }
 0x341   :  { %v1841_v24 = vadd.f32 %v1828_v49, %v1733_v20  ;;  %v3804_v20 = vld [vmem:[#allocation3 + $0x4a8] sm:$0xff] }
 0x342   :  { %1880 = vst [vmem:[#allocation2 + $0x1] sm:$0xff] %v1875_v22  ;;  %v1737_v26 = vpop.f32.mrf.mxu1  ;;  %2374 = vmatpush.bf16.msra.mxu3 %v3804_v20 }
 0x343   :  { %v1669_v28 = vpop.f32.mrf.mxu0  ;;  %v1851_v29 = vadd.f32 %v3858_v8, %v1841_v24  ;;  %v1738_v56 = vadd.f32 %v1737_v26, %v1666_v17 }
 0x345   :  { %vm1858_vm3 = vcmp.ge.f32.partialorder %v1851_v29, 0.0  ;;  %v1866_v30 = vmul.f32 %v3859_v16, %v1851_v29 }
 0x347   :  { %v1871_v32 = vsel %vm1858_vm3, %v1851_v29, %v1866_v30 }
 0x348   :  { %v1876_v33 = vmul.f32 %v4049_v42, %v1871_v32  ;;  %v1831_v34 = vpop.f32.mrf.mxu2  ;;  %v3811_v32 = vld [vmem:[#allocation3 + $0x4e0] sm:$0xff] }
 0x349   :  { %v1842_v36 = vadd.f32 %v1831_v34, %v1736_v23  ;;  %v1885_v45 = vld [vmem:[#allocation2] sm:$0xff]  ;;  %v3821_v23 = vld [vmem:[#allocation3 + $0x530] sm:$0xff]  ;;  %2304 = vmatpush.bf16.msra.mxu2 %v3811_v32  ;;  %v3820_v34 = vld [vmem:[#allocation3 + $0x528] sm:$0xff] }
 0x34a   :  { %1881 = vst [vmem:[#allocation2 + $0x9] sm:$0xff] %v1876_v33  ;;  %v1740_v38 = vpop.f32.mrf.mxu1  ;;  %v1915_v5 = vpack.c.bf16 %v1876_v33, %v1875_v22  ;;  %v3803_v33 = vld [vmem:[#allocation3 + $0x4a0] sm:$0xff]  ;;  %2469 = vmatpush.bf16.msrb.mxu0 %v3821_v23 }
 0x34b   :  { %v1671_v3 = vpop.f32.mrf.mxu0  ;;  %v1852_v11 = vadd.f32 %v3858_v8, %v1842_v36  ;;  %v1741_v39 = vadd.f32 %v1740_v38, %v1669_v28  ;;  %2375 = vmatpush.bf16.msra.mxu3 %v3803_v33  ;;  %v3810_v36 = vld [vmem:[#allocation3 + $0x4d8] sm:$0xff]  ;;  %v3809_v38 = vld [vmem:[#allocation3 + $0x4d0] sm:$0xff] }
 0x34c   :  { %1991 = vmatmul.bf16.vlgmr.msrb.gmra.mxu3 %v1915_v5  ;;  %v3802_v3 = vld [vmem:[#allocation3 + $0x498] sm:$0xff]  ;;  %v3819_v5 = vld [vmem:[#allocation3 + $0x520] sm:$0xff] }
 0x34d   :  { %vm1859_vm4 = vcmp.ge.f32.partialorder %v1852_v11, 0.0  ;;  %v1867_v41 = vmul.f32 %v3859_v16, %v1852_v11  ;;  %2305 = vmatpush.bf16.msra.mxu2 %v3810_v36 }
 0x34e   :  { %2470 = vmatpush.bf16.msrb.mxu0 %v3820_v34 }
 0x34f   :  { %v1872_v37 = vsel %vm1859_vm4, %v1852_v11, %v1867_v41  ;;  %2376 = vmatpush.bf16.msra.mxu3 %v3802_v3  ;;  %v3808_v11 = vld [vmem:[#allocation3 + $0x4c8] sm:$0xff]  ;;  %v3801_v41 = vld [vmem:[#allocation3 + $0x490] sm:$0xff] }
 0x350   :  { %v1877_v0 = vmul.f32 %v4056_v59, %v1872_v37  ;;  %v1833_v15 = vpop.f32.mrf.mxu2  ;;  %v3818_v37 = vld [vmem:[#allocation3 + $0x518] sm:$0xff] }
 0x351   :  { %v1843_v12 = vadd.f32 %v1833_v15, %v1738_v56  ;;  %v1886_v46 = vld [vmem:[#allocation2 + $0x8] sm:$0xff]  ;;  %2306 = vmatpush.bf16.msra.mxu2 %v3809_v38 }
 0x352   :  { %1882 = vst [vmem:[#allocation2 + $0x11] sm:$0xff] %v1877_v0  ;;  %v1742_v48 = vpop.f32.mrf.mxu1  ;;  %v1890_v50 = vpack.c.bf16 %v1886_v46, %v1885_v45  ;;  %v2077_v62 = vld [vmem:[#allocation2 + $0x2] sm:$0xff]  ;;  %2471 = vmatpush.bf16.msrb.mxu0 %v3819_v5 }
 0x353   :  { %v1853_v51 = vadd.f32 %v3858_v8, %v1843_v12  ;;  %v3807_v56 = vld [vmem:[#allocation3 + $0x4c0] sm:$0xff]  ;;  %2377 = vmatpush.bf16.msra.mxu3 %v3801_v41  ;;  %v3817_v12 = vld [vmem:[#allocation3 + $0x510] sm:$0xff]  ;;  %v3816_v48 = vld [vmem:[#allocation3 + $0x508] sm:$0xff] }
 0x354   :  { %2062 = vmatmul.bf16.vlgmr.msra.gmra.mxu0 %v1890_v50  ;;  %v3799_v45 = vld [vmem:[#allocation3 + $0x480] sm:$0xff]  ;;  %v3830_v41 = vld [vmem:[#allocation3 + $0x578] sm:$0xff] }
 0x355   :  { %vm1860_vm5 = vcmp.ge.f32.partialorder %v1853_v51, 0.0  ;;  %v1868_v52 = vmul.f32 %v3859_v16, %v1853_v51  ;;  %2307 = vmatpush.bf16.msra.mxu2 %v3808_v11 }
 0x356   :  { %2472 = vmatpush.bf16.msrb.mxu0 %v3818_v37  ;;  %v3838_v37 = vld [vmem:[#allocation3 + $0x5b8] sm:$0xff] }
 0x357   :  { %v1873_v58 = vsel %vm1860_vm5, %v1853_v51, %v1868_v52  ;;  %v3860_v52 = vld [vmem:[%s4228_s2 + $0x5] ss:$0 sm:$0xff]  ;;  %2634 = vmatpush.bf16.msrb.mxu1 %v3838_v37 }
 0x358   :  { %v1878_v60 = vmul.f32 %v4062_v6, %v1873_v58  ;;  %v1836_v61 = vpop.f32.mrf.mxu2 }
 0x359   :  { %v1844_v27 = vadd.f32 %v1836_v61, %v1741_v39  ;;  %v2078_v47 = vld [vmem:[#allocation2 + $0xa] sm:$0xff]  ;;  %2308 = vmatpush.bf16.msra.mxu2 %v3807_v56  ;;  %v3846_v56 = vld [vmem:[#allocation3 + $0x5f8] sm:$0xff] }
 0x35a   :  { %1883 = vst [vmem:[#allocation2 + $0x19] sm:$0xff] %v1878_v60  ;;  %v2082_v63 = vpack.c.bf16 %v2078_v47, %v2077_v62  ;;  %v1916_v54 = vpack.c.bf16 %v1878_v60, %v1877_v0  ;;  %v1887_v17 = vld [vmem:[#allocation2 + $0x10] sm:$0xff]  ;;  %2473 = vmatpush.bf16.msrb.mxu0 %v3817_v12  ;;  %v3815_v39 = vld [vmem:[#allocation3 + $0x500] sm:$0xff] }
 0x35b   :  { %v1854_v18 = vadd.f32 %v3858_v8, %v1844_v27  ;;  %v3800_v0 = vld [vmem:[#allocation3 + $0x488] sm:$0xff] }
 0x35c   :  { %2158 = vmatmul.bf16.vlgmr.msra.gmra.mxu1 %v2082_v63  ;;  %1996 = vmatmul.bf16.gmra.mxu3 %v1916_v54 }
 0x35d   :  { %vm1861_vm6 = vcmp.ge.f32.partialorder %v1854_v18, 0.0  ;;  %v1869_v4 = vmul.f32 %v3859_v16, %v1854_v18  ;;  %2378 = vmatpush.bf16.msra.mxu3 %v3800_v0  ;;  %2705 = vmatpush.bf16.msrb.mxu2 %v3830_v41  ;;  %v3829_v0 = vld [vmem:[#allocation3 + $0x570] sm:$0xff] }
 0x35e   :  { %2474 = vmatpush.bf16.msrb.mxu0 %v3816_v48 }
 0x35f   :  { %v1874_v10 = vsel %vm1861_vm6, %v1854_v18, %v1869_v4 }
 0x360   :  { %v1879_v14 = vmul.f32 %v4068_v31, %v1874_v10  ;;  %v1838_v43 = vpop.f32.mrf.mxu2 }
 0x361   :  { %v1888_v19 = vld [vmem:[#allocation2 + $0x18] sm:$0xff]  ;;  %2379 = vmatpush.bf16.msra.mxu3 %v3799_v45  ;;  %2706 = vmatpush.bf16.msrb.mxu2 %v3829_v0 }
 0x362   :  { %1884 = vst [vmem:[#allocation2 + $0x21] sm:$0x3] %v1879_v14  ;;  %v1891_v8 = vpack.c.bf16 %v1888_v19, %v1887_v17  ;;  %v2079_v16 = vld [vmem:[#allocation2 + $0x12] sm:$0xff]  ;;  %2475 = vmatpush.bf16.msrb.mxu0 %v3815_v39 }
 0x364   :  { %2067 = vmatmul.bf16.gmra.mxu0 %v1891_v8 }
 0x365   :  { %2801 = vmatpush.bf16.msrb.mxu3 %v3846_v56 }
 0x369   :  { %v2080_v21 = vld [vmem:[#allocation2 + $0x1a] sm:$0xff]  ;;  %v2081_v29 = vld [vmem:[#allocation2 + $0x22] sm:$0x3] }
 0x36a   :  { %v1914_v22 = vld [vmem:[#allocation2 + $0x21] sm:$0x3]  ;;  %v2083_v49 = vpack.c.bf16 %v2080_v21, %v2079_v16  ;;  %v2084_v30 = vpack.c.bf16 %v2081_v29, %v2081_v29 }
 0x36b   :  { %v1917_v24 = vpack.c.bf16 %v1914_v22, %v1914_v22  ;;  %v1889_v26 = vld [vmem:[#allocation2 + $0x20] sm:$0x3] }
 0x36c   :  { %2163 = vmatmul.bf16.gmra.mxu1 %v2083_v49  ;;  %v1892_v28 = vpack.c.bf16 %v1889_v26, %v1889_v26 }
 0x36d   :  { %2001 = vmatmul.bf16.gmra.mxu3 %v1917_v24 }
 0x374   :  { %2072 = vmatmul.bf16.gmra.mxu0 %v1892_v28 }
 0x37c   :  { %2168 = vmatmul.bf16.gmra.mxu1 %v2084_v30 }
 0x3cf   :  { %v1992_v15 = vpop.f32.mrf.mxu3 }
 0x3d1   :  { %v2063_v46 = vpop.f32.mrf.mxu0 }
 0x3d2   :  { %v2064_v51 = vadd.f32 %v2063_v46, %v1992_v15  ;;  %v3845_v15 = vld [vmem:[#allocation3 + $0x5f0] sm:$0xff] }
 0x3d3   :  { %2802 = vmatpush.bf16.msrb.mxu3 %v3845_v15 }
 0x3d7   :  { %v1994_v50 = vpop.f32.mrf.mxu3 }
 0x3d9   :  { %v2065_v58 = vpop.f32.mrf.mxu0  ;;  %v2159_v60 = vpop.f32.mrf.mxu1 }
 0x3da   :  { %v2173_v61 = vadd.f32 %v2159_v60, %v2064_v51  ;;  %v2066_v54 = vadd.f32 %v2065_v58, %v1994_v50 }
 0x3dc   :  { %v2183_v27 = vadd.f32 %v3860_v52, %v2173_v61 }
 0x3de   :  { %v2188_v62 = vmul.f32 %v4042_v25, %v2183_v27 }
 0x3df   :  { %v1997_v47 = vpop.f32.mrf.mxu3 }
 0x3e0   :  { %v4163_v63 = vadd.f32 %v2188_v62, %v4120_v44 }
 0x3e1   :  { %v2068_v18 = vpop.f32.mrf.mxu0  ;;  %v2161_v35 = vpop.f32.mrf.mxu1 }
 0x3e2   :  { %2198 = vst [vmem:[#allocation2 + $0x1] sm:$0xff] %v4163_v63  ;;  %v2174_v2 = vadd.f32 %v2161_v35, %v2066_v54  ;;  %v2069_v10 = vadd.f32 %v2068_v18, %v1997_v47  ;;  %v3837_v47 = vld [vmem:[#allocation3 + $0x5b0] sm:$0xff]  ;;  %v3836_v54 = vld [vmem:[#allocation3 + $0x5a8] sm:$0xff]  ;;  %v3835_v35 = vld [vmem:[#allocation3 + $0x5a0] sm:$0xff] }
 0x3e3   :  { %2635 = vmatpush.bf16.msrb.mxu1 %v3837_v47  ;;  %v3828_v18 = vld [vmem:[#allocation3 + $0x568] sm:$0xff] }
 0x3e4   :  { %v2184_v4 = vadd.f32 %v3860_v52, %v2174_v2  ;;  %2707 = vmatpush.bf16.msrb.mxu2 %v3828_v18  ;;  %v3834_v2 = vld [vmem:[#allocation3 + $0x598] sm:$0xff] }
 0x3e6   :  { %v2189_v40 = vmul.f32 %v4049_v42, %v2184_v4  ;;  %v3827_v4 = vld [vmem:[#allocation3 + $0x560] sm:$0xff] }
 0x3e7   :  { %v1999_v7 = vpop.f32.mrf.mxu3  ;;  %2636 = vmatpush.bf16.msrb.mxu1 %v3836_v54 }
 0x3e8   :  { %v4168_v9 = vadd.f32 %v2189_v40, %v4125_v57  ;;  %v3833_v40 = vld [vmem:[#allocation3 + $0x590] sm:$0xff]  ;;  %2708 = vmatpush.bf16.msrb.mxu2 %v3827_v4 }
 0x3e9   :  { %v2070_v14 = vpop.f32.mrf.mxu0  ;;  %v2164_v43 = vpop.f32.mrf.mxu1  ;;  %v2203_v22 = vld [vmem:[#allocation2] sm:$0xff] }
 0x3ea   :  { %2199 = vst [vmem:[#allocation2 + $0x9] sm:$0xff] %v4168_v9  ;;  %v2175_v44 = vadd.f32 %v2164_v43, %v2069_v10  ;;  %v2233_v17 = vpack.c.bf16 %v4168_v9, %v4163_v63  ;;  %v2071_v16 = vadd.f32 %v2070_v14, %v1999_v7  ;;  %v3844_v7 = vld [vmem:[#allocation3 + $0x5e8] sm:$0xff]  ;;  %v3843_v10 = vld [vmem:[#allocation3 + $0x5e0] sm:$0xff]  ;;  %v3826_v14 = vld [vmem:[#allocation3 + $0x558] sm:$0xff] }
 0x3eb   :  { %2637 = vmatpush.bf16.msrb.mxu1 %v3835_v35  ;;  %2803 = vmatpush.bf16.msrb.mxu3 %v3844_v7  ;;  %v3832_v43 = vld [vmem:[#allocation3 + $0x588] sm:$0xff] }
 0x3ec   :  { %v2185_v19 = vadd.f32 %v3860_v52, %v2175_v44  ;;  %2309 = vmatmul.bf16.vlgmr.msra.gmra.mxu2 %v2233_v17  ;;  %v3825_v44 = vld [vmem:[#allocation3 + $0x550] sm:$0xff]  ;;  %v3831_v17 = vld [vmem:[#allocation3 + $0x580] sm:$0xff] }
 0x3ed   :  { %2709 = vmatpush.bf16.msrb.mxu2 %v3826_v14 }
 0x3ee   :  { %v2190_v8 = vmul.f32 %v4056_v59, %v2185_v19  ;;  %v3842_v19 = vld [vmem:[#allocation3 + $0x5d8] sm:$0xff] }
 0x3ef   :  { %2638 = vmatpush.bf16.msrb.mxu1 %v3834_v2  ;;  %2804 = vmatpush.bf16.msrb.mxu3 %v3843_v10 }
 0x3f0   :  { %v2002_v55 = vpop.f32.mrf.mxu3  ;;  %v4175_v20 = vadd.f32 %v2190_v8, %v4132_v1  ;;  %v3824_v8 = vld [vmem:[#allocation3 + $0x548] sm:$0xff] }
 0x3f1   :  { %v2073_v57 = vpop.f32.mrf.mxu0  ;;  %v2166_v21 = vpop.f32.mrf.mxu1  ;;  %v2204_v49 = vld [vmem:[#allocation2 + $0x8] sm:$0xff]  ;;  %2710 = vmatpush.bf16.msrb.mxu2 %v3825_v44 }
 0x3f2   :  { %2200 = vst [vmem:[#allocation2 + $0x11] sm:$0xff] %v4175_v20  ;;  %v2176_v24 = vadd.f32 %v2166_v21, %v2071_v16  ;;  %v2208_v26 = vpack.c.bf16 %v2204_v49, %v2203_v22  ;;  %v2074_v32 = vadd.f32 %v2073_v57, %v2002_v55  ;;  %v2395_v34 = vld [vmem:[#allocation2 + $0x2] sm:$0xff]  ;;  %v3841_v16 = vld [vmem:[#allocation3 + $0x5d0] sm:$0xff]  ;;  %v3840_v21 = vld [vmem:[#allocation3 + $0x5c8] sm:$0xff] }
 0x3f3   :  { %2639 = vmatpush.bf16.msrb.mxu1 %v3833_v40  ;;  %2805 = vmatpush.bf16.msrb.mxu3 %v3842_v19  ;;  %v3823_v57 = vld [vmem:[#allocation3 + $0x540] sm:$0xff] }
 0x3f4   :  { %v2186_v28 = vadd.f32 %v3860_v52, %v2176_v24  ;;  %2380 = vmatmul.bf16.vlgmr.msra.gmra.mxu3 %v2208_v26  ;;  %v3861_v26 = vld [vmem:[%s4228_s2 + $0x6] ss:$0 sm:$0xff] }
 0x3f5   :  { %2711 = vmatpush.bf16.msrb.mxu2 %v3824_v8 }
 0x3f6   :  { %v2191_v29 = vmul.f32 %v4062_v6, %v2186_v28 }
 0x3f7   :  { %2640 = vmatpush.bf16.msrb.mxu1 %v3832_v43  ;;  %2806 = vmatpush.bf16.msrb.mxu3 %v3841_v16 }
 0x3f8   :  { %v2004_v30 = vpop.f32.mrf.mxu3  ;;  %v4180_v23 = vadd.f32 %v2191_v29, %v4137_v13  ;;  %v3839_v29 = vld [vmem:[#allocation3 + $0x5c0] sm:$0xff] }
 0x3f9   :  { %v2075_v1 = vpop.f32.mrf.mxu0  ;;  %v2169_v33 = vpop.f32.mrf.mxu1  ;;  %v2396_v36 = vld [vmem:[#allocation2 + $0xa] sm:$0xff]  ;;  %2712 = vmatpush.bf16.msrb.mxu2 %v3823_v57 }
 0x3fa   :  { %2201 = vst [vmem:[#allocation2 + $0x19] sm:$0xff] %v4180_v23  ;;  %v2177_v38 = vadd.f32 %v2169_v33, %v2074_v32  ;;  %v2400_v3 = vpack.c.bf16 %v2396_v36, %v2395_v34  ;;  %v2234_v5 = vpack.c.bf16 %v4180_v23, %v4175_v20  ;;  %v2205_v46 = vld [vmem:[#allocation2 + $0x10] sm:$0xff]  ;;  %v3862_v32 = vld [vmem:[%s4229_s3 + $0x3] ss:$0 sm:$0xff] }
 0x3fb   :  { %2641 = vmatpush.bf16.msrb.mxu1 %v3831_v17  ;;  %2807 = vmatpush.bf16.msrb.mxu3 %v3840_v21 }
 0x3fc   :  { %v2187_v11 = vadd.f32 %v3860_v52, %v2177_v38  ;;  %2476 = vmatmul.bf16.vlgmr.msrb.gmra.mxu0 %v2400_v3  ;;  %2314 = vmatmul.bf16.gmra.mxu2 %v2234_v5 }
 0x3fe   :  { %v2192_v13 = vmul.f32 %v4068_v31, %v2187_v11 }
 0x3ff   :  { %2808 = vmatpush.bf16.msrb.mxu3 %v3839_v29 }
 0x400   :  { %v4187_v12 = vadd.f32 %v2192_v13, %v4144_v53 }
 0x401   :  { %v2171_v45 = vpop.f32.mrf.mxu1  ;;  %v2206_v48 = vld [vmem:[#allocation2 + $0x18] sm:$0xff] }
 0x402   :  { %2202 = vst [vmem:[#allocation2 + $0x21] sm:$0x3] %v4187_v12  ;;  %v2209_v50 = vpack.c.bf16 %v2206_v48, %v2205_v46  ;;  %v2397_v51 = vld [vmem:[#allocation2 + $0x12] sm:$0xff] }
 0x404   :  { %2385 = vmatmul.bf16.gmra.mxu3 %v2209_v50 }
 0x409   :  { %v2398_v52 = vld [vmem:[#allocation2 + $0x1a] sm:$0xff]  ;;  %v2399_v53 = vld [vmem:[#allocation2 + $0x22] sm:$0x3] }
 0x40a   :  { %v2232_v39 = vld [vmem:[#allocation2 + $0x21] sm:$0x3]  ;;  %v2401_v58 = vpack.c.bf16 %v2398_v52, %v2397_v51  ;;  %v2402_v62 = vpack.c.bf16 %v2399_v53, %v2399_v53 }
 0x40b   :  { %v2235_v60 = vpack.c.bf16 %v2232_v39, %v2232_v39  ;;  %v2207_v61 = vld [vmem:[#allocation2 + $0x20] sm:$0x3] }
 0x40c   :  { %2481 = vmatmul.bf16.gmra.mxu0 %v2401_v58  ;;  %v2210_v27 = vpack.c.bf16 %v2207_v61, %v2207_v61 }
 0x40d   :  { %2319 = vmatmul.bf16.gmra.mxu2 %v2235_v60 }
 0x414   :  { %2390 = vmatmul.bf16.gmra.mxu3 %v2210_v27 }
 0x41c   :  { %2486 = vmatmul.bf16.gmra.mxu0 %v2402_v62 }
 0x46f   :  { %v2310_v55 = vpop.f32.mrf.mxu2 }
 0x477   :  { %v2381_v22 = vpop.f32.mrf.mxu3  ;;  %v2312_v49 = vpop.f32.mrf.mxu2 }
 0x478   :  { %v2382_v24 = vadd.f32 %v2381_v22, %v2310_v55 }
 0x479   :  { %v2477_v28 = vpop.f32.mrf.mxu0 }
 0x47a   :  { %v2491_v30 = vadd.f32 %v2477_v28, %v2382_v24 }
 0x47c   :  { %v2501_v1 = vadd.f32 %v3861_v26, %v2491_v30 }
 0x47e   :  { %vm2508_vm7 = vcmp.ge.f32.partialorder %v2501_v1, 0.0  ;;  %v2516_v33 = vmul.f32 %v3862_v32, %v2501_v1 }
 0x47f   :  { %v2383_v34 = vpop.f32.mrf.mxu3  ;;  %v2315_v36 = vpop.f32.mrf.mxu2 }
 0x480   :  { %v2521_v38 = vsel %vm2508_vm7, %v2501_v1, %v2516_v33  ;;  %v2384_v3 = vadd.f32 %v2383_v34, %v2312_v49 }
 0x481   :  { %v2526_v5 = vmul.f32 %v4042_v25, %v2521_v38  ;;  %v2479_v11 = vpop.f32.mrf.mxu0 }
 0x482   :  { %v2492_v41 = vadd.f32 %v2479_v11, %v2384_v3 }
 0x483   :  { %2531 = vst [vmem:[#allocation2 + $0x1] sm:$0xff] %v2526_v5 }
 0x484   :  { %v2502_v56 = vadd.f32 %v3861_v26, %v2492_v41 }
 0x486   :  { %vm2509_vm8 = vcmp.ge.f32.partialorder %v2502_v56, 0.0  ;;  %v2517_v37 = vmul.f32 %v3862_v32, %v2502_v56 }
 0x487   :  { %v2386_v13 = vpop.f32.mrf.mxu3  ;;  %v2317_v0 = vpop.f32.mrf.mxu2 }
 0x488   :  { %v2522_v15 = vsel %vm2509_vm8, %v2502_v56, %v2517_v37  ;;  %v2387_v45 = vadd.f32 %v2386_v13, %v2315_v36 }
 0x489   :  { %v2527_v46 = vmul.f32 %v4049_v42, %v2522_v15  ;;  %v2482_v48 = vpop.f32.mrf.mxu0  ;;  %v3863_v15 = vld [vmem:[%s4228_s2 + $0x7] ss:$0 sm:$0xff] }
 0x48a   :  { %v2493_v50 = vadd.f32 %v2482_v48, %v2387_v45  ;;  %v2536_v54 = vld [vmem:[#allocation2] sm:$0xff] }
 0x48b   :  { %2532 = vst [vmem:[#allocation2 + $0x9] sm:$0xff] %v2527_v46  ;;  %v2566_v51 = vpack.c.bf16 %v2527_v46, %v2526_v5 }
 0x48c   :  { %v2503_v52 = vadd.f32 %v3861_v26, %v2493_v50 }
 0x48d   :  { %2642 = vmatmul.bf16.vlgmr.msrb.gmra.mxu1 %v2566_v51 }
 0x48e   :  { %vm2510_vm9 = vcmp.ge.f32.partialorder %v2503_v52, 0.0  ;;  %v2518_v39 = vmul.f32 %v3862_v32, %v2503_v52 }
 0x48f   :  { %v2388_v58 = vpop.f32.mrf.mxu3 }
 0x490   :  { %v2320_v60 = vpop.f32.mrf.mxu2  ;;  %v2523_v61 = vsel %vm2510_vm9, %v2503_v52, %v2518_v39  ;;  %v2389_v27 = vadd.f32 %v2388_v58, %v2317_v0 }
 0x491   :  { %v2528_v53 = vmul.f32 %v4056_v59, %v2523_v61  ;;  %v2484_v62 = vpop.f32.mrf.mxu0 }
 0x492   :  { %v2494_v47 = vadd.f32 %v2484_v62, %v2389_v27  ;;  %v2537_v18 = vld [vmem:[#allocation2 + $0x8] sm:$0xff] }
 0x493   :  { %2533 = vst [vmem:[#allocation2 + $0x11] sm:$0xff] %v2528_v53  ;;  %v2541_v35 = vpack.c.bf16 %v2537_v18, %v2536_v54  ;;  %v2728_v19 = vld [vmem:[#allocation2 + $0x2] sm:$0xff] }
 0x494   :  { %v2504_v2 = vadd.f32 %v3861_v26, %v2494_v47 }
 0x495   :  { %2713 = vmatmul.bf16.vlgmr.msrb.gmra.mxu2 %v2541_v35 }
 0x496   :  { %vm2511_vm10 = vcmp.ge.f32.partialorder %v2504_v2, 0.0  ;;  %v2519_v4 = vmul.f32 %v3862_v32, %v2504_v2 }
 0x497   :  { %v2391_v40 = vpop.f32.mrf.mxu3 }
 0x498   :  { %v2322_v7 = vpop.f32.mrf.mxu2  ;;  %v2524_v10 = vsel %vm2511_vm10, %v2504_v2, %v2519_v4  ;;  %v2392_v14 = vadd.f32 %v2391_v40, %v2320_v60 }
 0x499   :  { %v2529_v43 = vmul.f32 %v4062_v6, %v2524_v10  ;;  %v2487_v44 = vpop.f32.mrf.mxu0 }
 0x49a   :  { %v2495_v17 = vadd.f32 %v2487_v44, %v2392_v14  ;;  %v2729_v8 = vld [vmem:[#allocation2 + $0xa] sm:$0xff] }
 0x49b   :  { %2534 = vst [vmem:[#allocation2 + $0x19] sm:$0xff] %v2529_v43  ;;  %v2733_v55 = vpack.c.bf16 %v2729_v8, %v2728_v19  ;;  %v2567_v16 = vpack.c.bf16 %v2529_v43, %v2528_v53  ;;  %v2538_v29 = vld [vmem:[#allocation2 + $0x10] sm:$0xff] }
 0x49c   :  { %v2505_v57 = vadd.f32 %v3861_v26, %v2495_v17 }
 0x49d   :  { %2809 = vmatmul.bf16.vlgmr.msrb.gmra.mxu3 %v2733_v55  ;;  %2647 = vmatmul.bf16.gmra.mxu1 %v2567_v16 }
 0x49e   :  { %vm2512_vm11 = vcmp.ge.f32.partialorder %v2505_v57, 0.0  ;;  %v2520_v21 = vmul.f32 %v3862_v32, %v2505_v57 }
 0x49f   :  { %v2393_v22 = vpop.f32.mrf.mxu3 }
 0x4a0   :  { %v2525_v49 = vsel %vm2512_vm11, %v2505_v57, %v2520_v21 }
 0x4a1   :  { %v2530_v24 = vmul.f32 %v4068_v31, %v2525_v49  ;;  %v2489_v28 = vpop.f32.mrf.mxu0 }
 0x4a2   :  { %v2539_v30 = vld [vmem:[#allocation2 + $0x18] sm:$0xff] }
 0x4a3   :  { %2535 = vst [vmem:[#allocation2 + $0x21] sm:$0x3] %v2530_v24  ;;  %v2542_v1 = vpack.c.bf16 %v2539_v30, %v2538_v29  ;;  %v2730_v33 = vld [vmem:[#allocation2 + $0x12] sm:$0xff] }
 0x4a5   :  { %2718 = vmatmul.bf16.gmra.mxu2 %v2542_v1 }
 0x4aa   :  { %v2731_v34 = vld [vmem:[#allocation2 + $0x1a] sm:$0xff]  ;;  %v2732_v32 = vld [vmem:[#allocation2 + $0x22] sm:$0x3] }
 0x4ab   :  { %v2565_v36 = vld [vmem:[#allocation2 + $0x21] sm:$0x3]  ;;  %v2734_v38 = vpack.c.bf16 %v2731_v34, %v2730_v33  ;;  %v2735_v11 = vpack.c.bf16 %v2732_v32, %v2732_v32 }
 0x4ac   :  { %v2568_v3 = vpack.c.bf16 %v2565_v36, %v2565_v36  ;;  %v2540_v26 = vld [vmem:[#allocation2 + $0x20] sm:$0x3] }
 0x4ad   :  { %2814 = vmatmul.bf16.gmra.mxu3 %v2734_v38  ;;  %v2543_v5 = vpack.c.bf16 %v2540_v26, %v2540_v26 }
 0x4ae   :  { %2652 = vmatmul.bf16.gmra.mxu1 %v2568_v3 }
 0x4b5   :  { %2723 = vmatmul.bf16.gmra.mxu2 %v2543_v5 }
 0x4bd   :  { %2819 = vmatmul.bf16.gmra.mxu3 %v2735_v11 }
 0x50a   :  { %v2643_v41 = vpop.f32.mrf.mxu1 }
 0x512   :  { %v2645_v56 = vpop.f32.mrf.mxu1 }
 0x518   :  { %v2714_v37 = vpop.f32.mrf.mxu2 }
 0x519   :  { %v2715_v0 = vadd.f32 %v2714_v37, %v2643_v41 }
 0x51a   :  { %v2648_v13 = vpop.f32.mrf.mxu1 }
 0x520   :  { %v2716_v45 = vpop.f32.mrf.mxu2  ;;  %v2810_v46 = vpop.f32.mrf.mxu3 }
 0x521   :  { %v2824_v48 = vadd.f32 %v2810_v46, %v2715_v0  ;;  %v2717_v39 = vadd.f32 %v2716_v45, %v2645_v56 }
 0x522   :  { %v2650_v50 = vpop.f32.mrf.mxu1 }
 0x523   :  { %v2834_v51 = vadd.f32 %v3863_v15, %v2824_v48 }
 0x525   :  { %v2839_v52 = vmul.f32 %v4042_v25, %v2834_v51 }
 0x527   :  { %v2844_v58 = vadd.f32 %v2839_v52, %v4163_v63 }
 0x528   :  { %v2719_v60 = vpop.f32.mrf.mxu2  ;;  %v2812_v61 = vpop.f32.mrf.mxu3 }
 0x529   :  { %2849 = vst [vmem:[#allocation2 + $0x1] sm:$0xff] %v2844_v58  ;;  %v2825_v27 = vadd.f32 %v2812_v61, %v2717_v39  ;;  %v2720_v54 = vadd.f32 %v2719_v60, %v2648_v13 }
 0x52a   :  { %2856 = vst [vmem:[%s4230_s4] sm:$0xff] %v2844_v58 }
 0x52b   :  { %v2653_v53 = vpop.f32.mrf.mxu1  ;;  %v2835_v62 = vadd.f32 %v3863_v15, %v2825_v27 }
 0x52d   :  { %v2840_v47 = vmul.f32 %v4049_v42, %v2835_v62 }
 0x52f   :  { %v2845_v18 = vadd.f32 %v2840_v47, %v4168_v9 }
 0x530   :  { %v2721_v35 = vpop.f32.mrf.mxu2  ;;  %v2815_v25 = vpop.f32.mrf.mxu3 }
 0x531   :  { %2850 = vst [vmem:[#allocation2 + $0x9] sm:$0xff] %v2845_v18  ;;  %v2826_v2 = vadd.f32 %v2815_v25, %v2720_v54  ;;  %v2722_v7 = vadd.f32 %v2721_v35, %v2650_v50 }
 0x532   :  { %2857 = vst [vmem:[%s4230_s4 + $0x8] sm:$0xff] %v2845_v18 }
 0x533   :  { %v2655_v63 = vpop.f32.mrf.mxu1  ;;  %v2836_v4 = vadd.f32 %v3863_v15, %v2826_v2 }
 0x535   :  { %v2841_v40 = vmul.f32 %v4056_v59, %v2836_v4 }
 0x537   :  { %v2846_v10 = vadd.f32 %v2841_v40, %v4175_v20 }
 0x538   :  { %v2724_v14 = vpop.f32.mrf.mxu2  ;;  %v2817_v42 = vpop.f32.mrf.mxu3 }
 0x539   :  { %2851 = vst [vmem:[#allocation2 + $0x11] sm:$0xff] %v2846_v10  ;;  %v2827_v43 = vadd.f32 %v2817_v42, %v2722_v7  ;;  %v2725_v17 = vadd.f32 %v2724_v14, %v2653_v53 }
 0x53b   :  { %v2837_v9 = vadd.f32 %v3863_v15, %v2827_v43 }
 0x53d   :  { %v2842_v44 = vmul.f32 %v4062_v6, %v2837_v9 }
 0x53f   :  { %v2847_v19 = vadd.f32 %v2842_v44, %v4180_v23 }
 0x540   :  { %v2726_v8 = vpop.f32.mrf.mxu2  ;;  %v2820_v55 = vpop.f32.mrf.mxu3 }
 0x541   :  { %2852 = vst [vmem:[#allocation2 + $0x19] sm:$0xff] %v2847_v19  ;;  %v2828_v16 = vadd.f32 %v2820_v55, %v2725_v17 }
 0x543   :  { %v2838_v57 = vadd.f32 %v3863_v15, %v2828_v16 }
 0x545   :  { %v2843_v59 = vmul.f32 %v4068_v31, %v2838_v57 }
 0x547   :  { %v2848_v21 = vadd.f32 %v2843_v59, %v4187_v12 }
 0x548   :  { %v2858_v20 = vld [vmem:[#allocation2 + $0x13] sm:$0xff]  ;;  %v2822_v22 = vpop.f32.mrf.mxu3 }
 0x549   :  { %3653 = vst [vmem:[%s4230_s4 + $0x10] sm:$0xff] %v2858_v20 }
 0x54a   :  { %2853 = vst [vmem:[#allocation2 + $0x21] sm:$0x3] %v2848_v21 }
 0x551   :  { %v2859_v6 = vld [vmem:[#allocation2 + $0x1b] sm:$0xff] }
 0x552   :  { %3654 = vst [vmem:[%s4230_s4 + $0x18] sm:$0xff] %v2859_v6 }
 0x553   :  { %2867 = vsyncpa [#allocation4], 1 }

</bundles_post_ra>
